<compile_context>
chip_gen: v6e
topology: v6e:2x2x1
jax: 0.10.0
libtpu: 0.0.40
codegen_flags: <defaults>
</compile_context>

<pallas_src>
import functools

import numpy as np
import jax
import jax.numpy as jnp
from jax.experimental import pallas as pl
from jax.experimental.pallas import tpu as pltpu

BN_EPS = 1e-5
NUM_BLOCKS = 3  # CSPRepLayer default num_blocks

_SOBEL_H = ((-1., -2., -1.), (0., 0., 0.), (1., 2., 1.))
_SOBEL_V = ((-1., 0., 1.), (-2., 0., 2.), (-1., 0., 1.))


def _silu(x):
    # x * sigmoid(x); exp and the approx reciprocal both execute on the EUP slot.
    return x * pl.reciprocal(1.0 + jnp.exp(-x), approx=True)


# ----------------------------- fused Pallas kernel ---------------------------

def _fused_kernel(x_ref, w12_ref, b12_ref, wb_ref, bb_ref, w3_ref, b3_ref,
                  o_ref, slab_ref, stack_ref, *, W, HW, hid, HALO):
    """Whole edgeCspLayer for one batch element; activations are (C, HWp)."""
    HWp = x_ref.shape[-1]                           # lane-padded spatial size

    x = x_ref[0]                                    # (3, HWp), spatial on lanes

    # ---- border / tail masks, materialised once (no per-tap rebroadcast) ----
    p = jax.lax.broadcasted_iota(jnp.int32, (1, HWp), 1)
    col = p % W
    m_left1 = (col >= 1).astype(jnp.float32)        # left neighbour exists
    m_right1 = (col <= W - 2).astype(jnp.float32)   # right neighbour exists
    ones_h = jnp.ones((hid, 1), jnp.float32)
    m_left = ones_h * m_left1                       # (hid, HWp), hoisted
    m_right = ones_h * m_right1
    m_tail = None
    if HWp != HW:                                   # zero the lane-padding tail
        m_tail = ones_h * (p < HW).astype(jnp.float32)

    # ---- zero the slab halo (every step: a 'parallel' core may start at any b) ----
    slab_ref[:, :HALO] = jnp.zeros((hid, HALO), jnp.float32)
    slab_ref[:, HALO + HWp:2 * HALO + HWp] = jnp.zeros((hid, HALO), jnp.float32)

    # ---- get_edge: Sobel h/v (F.conv2d cross-correlation, padding=1) on channel 2 ----
    slab_ref[0:1, HALO:HALO + HWp] = x[2:3, :]
    gh = jnp.zeros((1, HWp), jnp.float32)
    gv = jnp.zeros((1, HWp), jnp.float32)
    for i in range(3):
        for j in range(3):
            kh, kv = _SOBEL_H[i][j], _SOBEL_V[i][j]
            if kh == 0.0 and kv == 0.0:
                continue
            start = HALO + (i - 1) * W + (j - 1)
            win = slab_ref[0:1, start:start + HWp]
            if j == 0:
                win = win * m_left1
            elif j == 2:
                win = win * m_right1
            if kh != 0.0:
                gh = gh + kh * win
            if kv != 0.0:
                gv = gv + kv * win
    edge = jnp.sqrt(gh * gh + gv * gv)              # (1, HWp)

    # ---- conv1 / conv2 of CSPRepLayer: merged (2*hid, 4) matmul on [x | edge] ----
    cin_x = x.shape[0]                              # 3
    w12 = w12_ref[...]                              # (2*hid, 4)
    y12 = _silu(jnp.dot(w12[:, :cin_x], x, preferred_element_type=jnp.float32)
                + w12[:, cin_x:cin_x + 1] * edge    # edge column as outer product (VPU)
                + b12_ref[...])
    y1 = y12[:hid, :]                               # conv1 path (RepVgg blocks)
    y2 = y12[hid:, :]                               # conv2 path

    # ---- 3 RepVgg blocks, each ONE (hid, 9*hid) @ (9*hid, HWp) MXU dot --------
    # 1x1 branch is pre-folded into the centre-tap weights (RepVGG reparam).
    for blk in range(NUM_BLOCKS):
        if m_tail is not None:
            y1 = y1 * m_tail                        # keep conv zero-padding exact
        slab_ref[:, HALO:HALO + HWp] = y1           # lane-aligned centre write
        for i in range(3):
            for j in range(3):
                t = i * 3 + j
                if i == 1 and j == 1:
                    win = y1                        # centre tap == y1 (already in vregs)
                else:
                    start = HALO + (i - 1) * W + (j - 1)
                    win = slab_ref[:, start:start + HWp]
                    if j == 0:
                        win = win * m_left
                    elif j == 2:
                        win = win * m_right
                stack_ref[t * hid:(t + 1) * hid, :] = win
        y1 = _silu(jnp.dot(wb_ref[blk], stack_ref[...],
                           preferred_element_type=jnp.float32) + bb_ref[blk])

    # ---- conv3 on (y1 + y2) and outer residual with x1 -----------------------
    y = jnp.dot(w3_ref[...], y1 + y2, preferred_element_type=jnp.float32) + b3_ref[...]
    o_ref[0] = _silu(y) + x


# ----------------------------- wrapper ---------------------------------------

def _vmem_limit_bytes():
    """Generation-aware scoped-VMEM limit: ~3/4 of physical, capped at 96 MiB.
    v5e/v6e (128 MiB) -> 96 MiB; v7x (64 MiB) -> 48 MiB; unknown -> 48 MiB."""
    try:
        cap = int(pltpu.get_tpu_info().vmem_capacity_bytes)
    except Exception:
        cap = 64 << 20
    return int(min(96 << 20, max(32 << 20, (cap * 3) // 4)))


def edge_csp_layer_forward(x1_nchw, params):
    """Forward of edgeCspLayer. Input/output: NCHW float32, C == 3."""
    x1_nchw = x1_nchw.astype(jnp.float32)
    B, C, H, W = x1_nchw.shape
    if C != 3:
        raise ValueError("edgeCspLayer uses channel 2 for the edge and CSPRepLayer(4, 3)")

    HW = H * W
    HWp = ((HW + 127) // 128) * 128                 # lane-dense, unmasked stores
    HALO = ((W + 1 + 127) // 128) * 128             # >= W+1 and lane-aligned

    xf = x1_nchw.reshape(B, C, HW)                  # channels->sublanes, H*W->lanes
    if HWp != HW:
        xf = jnp.pad(xf, ((0, 0), (0, 0), (0, HWp - HW)))

    w12, b12 = params["w12"], params["b12"]
    wb_cat, bb = params["wb_cat"], params["bb"]
    w3, b3 = params["w3"], params["b3"]
    hid = params["hidden"]

    def full(shape):                                # whole-array (weight) block
        return pl.BlockSpec(shape, lambda b, _n=len(shape): (0,) * _n)

    kernel = functools.partial(_fused_kernel, W=W, HW=HW, hid=hid, HALO=HALO)
    out = pl.pallas_call(
        kernel,
        out_shape=jax.ShapeDtypeStruct((B, C, HWp), jnp.float32),
        grid=(B,),
        in_specs=[
            pl.BlockSpec((1, C, HWp), lambda b: (b, 0, 0)),
            full(w12.shape), full(b12.shape),
            full(wb_cat.shape), full(bb.shape),
            full(w3.shape), full(b3.shape),
        ],
        out_specs=pl.BlockSpec((1, C, HWp), lambda b: (b, 0, 0)),
        scratch_shapes=[
            pltpu.VMEM((hid, HWp + 2 * HALO), jnp.float32),   # zero-halo slab
            pltpu.VMEM((9 * hid, HWp), jnp.float32),          # stacked-tap matrix
        ],
        compiler_params=pltpu.CompilerParams(
            dimension_semantics=("parallel",),       # batch across TCs (v7x megacore)
            vmem_limit_bytes=_vmem_limit_bytes(),
        ),
    )(xf, w12, b12, wb_cat, bb, w3, b3)

    if HWp != HW:
        out = out[..., :HW]
    return out.reshape(B, C, H, W)


# ----------------------------- parameters -------------------------------------

def init_params(key, in_features=3):
    """Deterministic synthetic params for CSPRepLayer(4, 3, expansion=4), BN folded."""
    cin = in_features + 1          # 4 (x1 channels + edge channel)
    cout = in_features             # 3
    hidden = int(cout * 4)         # 12
    # BatchNorm default init: gamma=1, beta=0, running_mean=0, running_var=1
    bn_scale = 1.0 / float(np.sqrt(1.0 + BN_EPS))

    keys = jax.random.split(key, 3 + 2 * NUM_BLOCKS)

    def conv_w(k, shape):          # PyTorch conv weight layout (Co, Ci, kh, kw)
        return jax.random.normal(k, shape, jnp.float32) * 0.1

    w1 = conv_w(keys[0], (hidden, cin, 1, 1))[:, :, 0, 0] * bn_scale
    w2 = conv_w(keys[1], (hidden, cin, 1, 1))[:, :, 0, 0] * bn_scale
    w3 = conv_w(keys[2], (cout, hidden, 1, 1))[:, :, 0, 0] * bn_scale

    w33_list, w11_list, wbcat_list = [], [], []
    for i in range(NUM_BLOCKS):
        w33 = conv_w(keys[3 + 2 * i], (hidden, hidden, 3, 3)) * bn_scale
        w11 = conv_w(keys[4 + 2 * i], (hidden, hidden, 1, 1))[:, :, 0, 0] * bn_scale
        w33_list.append(w33)
        w11_list.append(w11)
        # One (co, ci) matrix per 3x3 tap, concatenated along ci: (hid, 9*hid).
        taps = [w33[:, :, a, b] for a in range(3) for b in range(3)]
        taps[4] = taps[4] + w11                      # RepVGG fold: 1x1 -> centre tap
        wbcat_list.append(jnp.concatenate(taps, axis=1))

    return dict(
        w12=jnp.concatenate([w1, w2], axis=0),       # (24, 4)  conv1|conv2 merged
        b12=jnp.zeros((2 * hidden, 1), jnp.float32), # BN beta=0, mean=0 -> zero bias
        wb_cat=jnp.stack(wbcat_list),                # (3, 12, 108) folded block weights
        bb=jnp.zeros((NUM_BLOCKS, hidden, 1), jnp.float32),
        w3=w3,                                       # (3, 12)
        b3=jnp.zeros((cout, 1), jnp.float32),
        # unfolded copies for the pure-JAX reference
        w33=jnp.stack(w33_list),                     # (3, 12, 12, 3, 3)
        w11=jnp.stack(w11_list),                     # (3, 12, 12)
        hidden=hidden,
    )


# ----------------------------- pure-JAX reference ------------------------------

def _reference_forward(x1, params):
    """lax.conv-based reference of the same forward, for numerical validation."""
    x1 = x1.astype(jnp.float32)
    hid = params["hidden"]
    dn = ("NCHW", "OIHW", "NCHW")
    hi = jax.lax.Precision.HIGHEST

    def conv(x, w):
        return jax.lax.conv_general_dilated(x, w, (1, 1), [(1, 1), (1, 1)],
                                            dimension_numbers=dn, precision=hi)

    def conv1x1(x, w):
        return jnp.einsum("oc,bchw->bohw", w, x, precision=hi)

    def silu(x):
        return x * jax.nn.sigmoid(x)

    kh = jnp.asarray(_SOBEL_H, jnp.float32).reshape(1, 1, 3, 3)
    kv = jnp.asarray(_SOBEL_V, jnp.float32).reshape(1, 1, 3, 3)
    x3 = x1[:, 2:3]
    edge = jnp.sqrt(conv(x3, kh) ** 2 + conv(x3, kv) ** 2)
    x2 = jnp.concatenate([x1, edge], axis=1)                 # (B, 4, H, W)

    y1 = silu(conv1x1(x2, params["w12"][:hid]))
    y2 = silu(conv1x1(x2, params["w12"][hid:]))
    for blk in range(NUM_BLOCKS):
        y1 = silu(conv(y1, params["w33"][blk]) + conv1x1(y1, params["w11"][blk]))
    return silu(conv1x1(y1 + y2, params["w3"])) + x1


if __name__ == "__main__":
    key = jax.random.PRNGKey(0)
    kx, kx2, kp = jax.random.split(key, 3)
    params = init_params(kp, in_features=3)
    fwd = jax.jit(functools.partial(edge_csp_layer_forward, params=params))

    # Lane-aligned case (H*W multiple of 128).
    x = jax.random.normal(kx, (2, 3, 16, 16), jnp.float32)   # NCHW, in_features=3
    out = jax.block_until_ready(fwd(x))
    assert out.shape == x.shape and out.dtype == jnp.float32
    ref = jax.block_until_ready(_reference_forward(x, params))
    np.testing.assert_allclose(np.asarray(out), np.asarray(ref), rtol=1e-2, atol=1e-2)

    # Unaligned RT-DETR-like level (20x20 -> HW=400 padded to 512 lanes in-wrapper).
    x20 = jax.random.normal(kx2, (1, 3, 20, 20), jnp.float32)
    out20 = jax.block_until_ready(fwd(x20))
    ref20 = jax.block_until_ready(_reference_forward(x20, params))
    np.testing.assert_allclose(np.asarray(out20), np.asarray(ref20), rtol=1e-2, atol=1e-2)

    print("KERNEL_OK")
</pallas_src>

<mosaic_0001>
module attributes {stable_mosaic.version = 11 : i64} {
  func.func @_fused_kernel(%arg0: i32, %arg1: memref<1x3x256xf32, #tpu.memory_space<vmem>>, %arg2: memref<24x4xf32, #tpu.memory_space<vmem>>, %arg3: memref<24x1xf32, #tpu.memory_space<vmem>>, %arg4: memref<3x12x108xf32, #tpu.memory_space<vmem>>, %arg5: memref<3x12x1xf32, #tpu.memory_space<vmem>>, %arg6: memref<3x12xf32, #tpu.memory_space<vmem>>, %arg7: memref<3x1xf32, #tpu.memory_space<vmem>>, %arg8: memref<1x3x256xf32, #tpu.memory_space<vmem>>, %arg9: memref<12x512xf32, #tpu.memory_space<vmem>>, %arg10: memref<108x256xf32, #tpu.memory_space<vmem>>) attributes {dimension_semantics = [#tpu.dimension_semantics<parallel>], iteration_bounds = array<i64: 2>, scalar_prefetch = 0 : i64, scratch_operands = 2 : i64, tpu.core_type = #tpu.core_type<tc>, window_params = [{transform_indices = @transform_0, window_bounds = array<i64: 1, 3, 256>}, {pipeline_mode = #tpu.pipeline_mode<synchronous>, transform_indices = @transform_1, window_bounds = array<i64: 24, 4>}, {pipeline_mode = #tpu.pipeline_mode<synchronous>, transform_indices = @transform_2, window_bounds = array<i64: 24, 1>}, {pipeline_mode = #tpu.pipeline_mode<synchronous>, transform_indices = @transform_3, window_bounds = array<i64: 3, 12, 108>}, {pipeline_mode = #tpu.pipeline_mode<synchronous>, transform_indices = @transform_4, window_bounds = array<i64: 3, 12, 1>}, {pipeline_mode = #tpu.pipeline_mode<synchronous>, transform_indices = @transform_5, window_bounds = array<i64: 3, 12>}, {pipeline_mode = #tpu.pipeline_mode<synchronous>, transform_indices = @transform_6, window_bounds = array<i64: 3, 1>}, {transform_indices = @transform_7, window_bounds = array<i64: 1, 3, 256>}]} {
    %c0 = arith.constant 0 : index
    %c0_0 = arith.constant 0 : index
    %c0_1 = arith.constant 0 : index
    %0 = vector.load %arg1[%c0, %c0_0, %c0_1] : memref<1x3x256xf32, #tpu.memory_space<vmem>>, vector<1x3x256xf32>
    %1 = vector.shape_cast %0 : vector<1x3x256xf32> to vector<3x256xf32>
    %2 = tpu.iota {dimensions = array<i32: 1>} : vector<1x256xi32>
    %c16_i32 = arith.constant 16 : i32
    %c0_i32 = arith.constant 0 : i32
    %3 = arith.cmpi eq, %c16_i32, %c0_i32 : i32
    %c1_i32 = arith.constant 1 : i32
    %4 = arith.select %3, %c1_i32, %c16_i32 : i32
    %5 = vector.broadcast %4 : i32 to vector<1x256xi32>
    %6 = arith.remsi %2, %5 : vector<1x256xi32>
    %c0_i32_2 = arith.constant 0 : i32
    %7 = vector.broadcast %c0_i32_2 : i32 to vector<1x256xi32>
    %8 = arith.cmpi ne, %6, %7 : vector<1x256xi32>
    %c0_i32_3 = arith.constant 0 : i32
    %9 = vector.broadcast %c0_i32_3 : i32 to vector<1x256xi32>
    %10 = arith.cmpi slt, %6, %9 : vector<1x256xi32>
    %c0_i32_4 = arith.constant 0 : i32
    %11 = arith.cmpi slt, %4, %c0_i32_4 : i32
    %12 = vector.broadcast %11 : i1 to vector<1x256xi1>
    %13 = vector.broadcast %12 : vector<1x256xi1> to vector<1x256xi1>
    %14 = arith.xori %10, %13 : vector<1x256xi1>
    %15 = arith.andi %14, %8 : vector<1x256xi1>
    %16 = vector.broadcast %4 : i32 to vector<1x256xi32>
    %17 = arith.addi %6, %16 : vector<1x256xi32>
    %18 = arith.select %15, %17, %6 : vector<1x256xi1>, vector<1x256xi32>
    %c1_i32_5 = arith.constant 1 : i32
    %19 = vector.broadcast %c1_i32_5 : i32 to vector<1x256xi32>
    %20 = arith.cmpi sge, %18, %19 : vector<1x256xi32>
    %21 = arith.extui %20 : vector<1x256xi1> to vector<1x256xi32>
    %22 = arith.sitofp %21 : vector<1x256xi32> to vector<1x256xf32>
    %c14_i32 = arith.constant 14 : i32
    %23 = vector.broadcast %c14_i32 : i32 to vector<1x256xi32>
    %24 = arith.cmpi sle, %18, %23 : vector<1x256xi32>
    %25 = arith.extui %24 : vector<1x256xi1> to vector<1x256xi32>
    %26 = arith.sitofp %25 : vector<1x256xi32> to vector<1x256xf32>
    %cst = arith.constant 1.000000e+00 : f32
    %27 = vector.broadcast %cst : f32 to vector<12x1xf32>
    %28 = vector.broadcast %27 : vector<12x1xf32> to vector<12x256xf32>
    %29 = vector.broadcast %22 : vector<1x256xf32> to vector<12x256xf32>
    %30 = arith.mulf %28, %29 : vector<12x256xf32>
    %31 = vector.broadcast %27 : vector<12x1xf32> to vector<12x256xf32>
    %32 = vector.broadcast %26 : vector<1x256xf32> to vector<12x256xf32>
    %33 = arith.mulf %31, %32 : vector<12x256xf32>
    %cst_6 = arith.constant 0.000000e+00 : f32
    %34 = vector.broadcast %cst_6 : f32 to vector<12x128xf32>
    %c0_7 = arith.constant 0 : index
    %c0_8 = arith.constant 0 : index
    %35 = vector.load %arg9[%c0_7, %c0_8] : memref<12x512xf32, #tpu.memory_space<vmem>>, vector<12x128xf32>
    tpu.vector_store %arg9[%c0_7, %c0_8], %34 {strides = array<i32>} : memref<12x512xf32, #tpu.memory_space<vmem>>, vector<12x128xf32>,
    %cst_9 = arith.constant 0.000000e+00 : f32
    %36 = vector.broadcast %cst_9 : f32 to vector<12x128xf32>
    %c0_10 = arith.constant 0 : index
    %c384 = arith.constant 384 : index
    %37 = vector.load %arg9[%c0_10, %c384] : memref<12x512xf32, #tpu.memory_space<vmem>>, vector<12x128xf32>
    tpu.vector_store %arg9[%c0_10, %c384], %36 {strides = array<i32>} : memref<12x512xf32, #tpu.memory_space<vmem>>, vector<12x128xf32>,
    %38 = vector.extract_strided_slice %1 {offsets = [2, 0], sizes = [1, 256], strides = [1, 1]} : vector<3x256xf32> to vector<1x256xf32>
    %c0_11 = arith.constant 0 : index
    %c128 = arith.constant 128 : index
    %39 = vector.load %arg9[%c0_11, %c128] : memref<12x512xf32, #tpu.memory_space<vmem>>, vector<1x256xf32>
    tpu.vector_store %arg9[%c0_11, %c128], %38 {strides = array<i32>} : memref<12x512xf32, #tpu.memory_space<vmem>>, vector<1x256xf32>,
    %cst_12 = arith.constant 0.000000e+00 : f32
    %40 = vector.broadcast %cst_12 : f32 to vector<1x256xf32>
    %cst_13 = arith.constant 0.000000e+00 : f32
    %41 = vector.broadcast %cst_13 : f32 to vector<1x256xf32>
    %c0_14 = arith.constant 0 : index
    %c111 = arith.constant 111 : index
    %42 = vector.load %arg9[%c0_14, %c111] : memref<12x512xf32, #tpu.memory_space<vmem>>, vector<1x256xf32>
    %43 = arith.mulf %42, %22 : vector<1x256xf32>
    %cst_15 = arith.constant -1.000000e+00 : f32
    %44 = vector.broadcast %cst_15 : f32 to vector<1x256xf32>
    %45 = arith.mulf %44, %43 : vector<1x256xf32>
    %46 = arith.addf %40, %45 : vector<1x256xf32>
    %cst_16 = arith.constant -1.000000e+00 : f32
    %47 = vector.broadcast %cst_16 : f32 to vector<1x256xf32>
    %48 = arith.mulf %47, %43 : vector<1x256xf32>
    %49 = arith.addf %41, %48 : vector<1x256xf32>
    %c0_17 = arith.constant 0 : index
    %c112 = arith.constant 112 : index
    %50 = vector.load %arg9[%c0_17, %c112] : memref<12x512xf32, #tpu.memory_space<vmem>>, vector<1x256xf32>
    %cst_18 = arith.constant -2.000000e+00 : f32
    %51 = vector.broadcast %cst_18 : f32 to vector<1x256xf32>
    %52 = arith.mulf %51, %50 : vector<1x256xf32>
    %53 = arith.addf %46, %52 : vector<1x256xf32>
    %c0_19 = arith.constant 0 : index
    %c113 = arith.constant 113 : index
    %54 = vector.load %arg9[%c0_19, %c113] : memref<12x512xf32, #tpu.memory_space<vmem>>, vector<1x256xf32>
    %55 = arith.mulf %54, %26 : vector<1x256xf32>
    %cst_20 = arith.constant -1.000000e+00 : f32
    %56 = vector.broadcast %cst_20 : f32 to vector<1x256xf32>
    %57 = arith.mulf %56, %55 : vector<1x256xf32>
    %58 = arith.addf %53, %57 : vector<1x256xf32>
    %cst_21 = arith.constant 1.000000e+00 : f32
    %59 = vector.broadcast %cst_21 : f32 to vector<1x256xf32>
    %60 = arith.mulf %59, %55 : vector<1x256xf32>
    %61 = arith.addf %49, %60 : vector<1x256xf32>
    %c0_22 = arith.constant 0 : index
    %c127 = arith.constant 127 : index
    %62 = vector.load %arg9[%c0_22, %c127] : memref<12x512xf32, #tpu.memory_space<vmem>>, vector<1x256xf32>
    %63 = arith.mulf %62, %22 : vector<1x256xf32>
    %cst_23 = arith.constant -2.000000e+00 : f32
    %64 = vector.broadcast %cst_23 : f32 to vector<1x256xf32>
    %65 = arith.mulf %64, %63 : vector<1x256xf32>
    %66 = arith.addf %61, %65 : vector<1x256xf32>
    %c0_24 = arith.constant 0 : index
    %c129 = arith.constant 129 : index
    %67 = vector.load %arg9[%c0_24, %c129] : memref<12x512xf32, #tpu.memory_space<vmem>>, vector<1x256xf32>
    %68 = arith.mulf %67, %26 : vector<1x256xf32>
    %cst_25 = arith.constant 2.000000e+00 : f32
    %69 = vector.broadcast %cst_25 : f32 to vector<1x256xf32>
    %70 = arith.mulf %69, %68 : vector<1x256xf32>
    %71 = arith.addf %66, %70 : vector<1x256xf32>
    %c0_26 = arith.constant 0 : index
    %c143 = arith.constant 143 : index
    %72 = vector.load %arg9[%c0_26, %c143] : memref<12x512xf32, #tpu.memory_space<vmem>>, vector<1x256xf32>
    %73 = arith.mulf %72, %22 : vector<1x256xf32>
    %cst_27 = arith.constant 1.000000e+00 : f32
    %74 = vector.broadcast %cst_27 : f32 to vector<1x256xf32>
    %75 = arith.mulf %74, %73 : vector<1x256xf32>
    %76 = arith.addf %58, %75 : vector<1x256xf32>
    %cst_28 = arith.constant -1.000000e+00 : f32
    %77 = vector.broadcast %cst_28 : f32 to vector<1x256xf32>
    %78 = arith.mulf %77, %73 : vector<1x256xf32>
    %79 = arith.addf %71, %78 : vector<1x256xf32>
    %c0_29 = arith.constant 0 : index
    %c144 = arith.constant 144 : index
    %80 = vector.load %arg9[%c0_29, %c144] : memref<12x512xf32, #tpu.memory_space<vmem>>, vector<1x256xf32>
    %cst_30 = arith.constant 2.000000e+00 : f32
    %81 = vector.broadcast %cst_30 : f32 to vector<1x256xf32>
    %82 = arith.mulf %81, %80 : vector<1x256xf32>
    %83 = arith.addf %76, %82 : vector<1x256xf32>
    %c0_31 = arith.constant 0 : index
    %c145 = arith.constant 145 : index
    %84 = vector.load %arg9[%c0_31, %c145] : memref<12x512xf32, #tpu.memory_space<vmem>>, vector<1x256xf32>
    %85 = arith.mulf %84, %26 : vector<1x256xf32>
    %cst_32 = arith.constant 1.000000e+00 : f32
    %86 = vector.broadcast %cst_32 : f32 to vector<1x256xf32>
    %87 = arith.mulf %86, %85 : vector<1x256xf32>
    %88 = arith.addf %83, %87 : vector<1x256xf32>
    %cst_33 = arith.constant 1.000000e+00 : f32
    %89 = vector.broadcast %cst_33 : f32 to vector<1x256xf32>
    %90 = arith.mulf %89, %85 : vector<1x256xf32>
    %91 = arith.addf %79, %90 : vector<1x256xf32>
    %92 = arith.mulf %88, %88 : vector<1x256xf32>
    %93 = arith.mulf %91, %91 : vector<1x256xf32>
    %94 = arith.addf %92, %93 : vector<1x256xf32>
    %95 = math.sqrt %94 : vector<1x256xf32>
    %c0_34 = arith.constant 0 : index
    %c0_35 = arith.constant 0 : index
    %96 = vector.load %arg2[%c0_34, %c0_35] : memref<24x4xf32, #tpu.memory_space<vmem>>, vector<24x4xf32>
    %97 = vector.extract_strided_slice %96 {offsets = [0, 0], sizes = [24, 3], strides = [1, 1]} : vector<24x4xf32> to vector<24x3xf32>
    %cst_36 = arith.constant dense<0.000000e+00> : vector<24x256xf32>
    %98 = tpu.matmul %97, %1, %cst_36 {dimension_numbers = #tpu.dot_dimension_numbers<[1], [0], [0], [1], [0, 0, 1, 1], [], []>} : vector<24x3xf32>, vector<3x256xf32>, vector<24x256xf32> -> vector<24x256xf32>
    %99 = vector.extract_strided_slice %96 {offsets = [0, 3], sizes = [24, 1], strides = [1, 1]} : vector<24x4xf32> to vector<24x1xf32>
    %100 = vector.broadcast %99 : vector<24x1xf32> to vector<24x256xf32>
    %101 = vector.broadcast %95 : vector<1x256xf32> to vector<24x256xf32>
    %102 = arith.mulf %100, %101 : vector<24x256xf32>
    %103 = arith.addf %98, %102 : vector<24x256xf32>
    %c0_37 = arith.constant 0 : index
    %c0_38 = arith.constant 0 : index
    %104 = vector.load %arg3[%c0_37, %c0_38] : memref<24x1xf32, #tpu.memory_space<vmem>>, vector<24x1xf32>
    %105 = vector.broadcast %104 : vector<24x1xf32> to vector<24x256xf32>
    %106 = arith.addf %103, %105 : vector<24x256xf32>
    %cst_39 = arith.constant 0.000000e+00 : f32
    %107 = vector.broadcast %cst_39 : f32 to vector<24x256xf32>
    %108 = arith.subf %107, %106 : vector<24x256xf32>
    %109 = math.exp %108 : vector<24x256xf32>
    %cst_40 = arith.constant 1.000000e+00 : f32
    %110 = vector.broadcast %cst_40 : f32 to vector<24x256xf32>
    %111 = arith.addf %110, %109 : vector<24x256xf32>
    %112 = tpu.reciprocal %111 {approx = true} : vector<24x256xf32> -> vector<24x256xf32>
    %113 = arith.mulf %106, %112 : vector<24x256xf32>
    %114 = vector.extract_strided_slice %113 {offsets = [0, 0], sizes = [12, 256], strides = [1, 1]} : vector<24x256xf32> to vector<12x256xf32>
    %115 = vector.extract_strided_slice %113 {offsets = [12, 0], sizes = [12, 256], strides = [1, 1]} : vector<24x256xf32> to vector<12x256xf32>
    %c0_41 = arith.constant 0 : index
    %c128_42 = arith.constant 128 : index
    %116 = vector.load %arg9[%c0_41, %c128_42] : memref<12x512xf32, #tpu.memory_space<vmem>>, vector<12x256xf32>
    tpu.vector_store %arg9[%c0_41, %c128_42], %114 {strides = array<i32>} : memref<12x512xf32, #tpu.memory_space<vmem>>, vector<12x256xf32>,
    %c0_43 = arith.constant 0 : index
    %c111_44 = arith.constant 111 : index
    %117 = vector.load %arg9[%c0_43, %c111_44] : memref<12x512xf32, #tpu.memory_space<vmem>>, vector<12x256xf32>
    %118 = arith.mulf %117, %30 : vector<12x256xf32>
    %c0_45 = arith.constant 0 : index
    %c0_46 = arith.constant 0 : index
    %119 = vector.load %arg10[%c0_45, %c0_46] : memref<108x256xf32, #tpu.memory_space<vmem>>, vector<12x256xf32>
    tpu.vector_store %arg10[%c0_45, %c0_46], %118 {strides = array<i32>} : memref<108x256xf32, #tpu.memory_space<vmem>>, vector<12x256xf32>,
    %c0_47 = arith.constant 0 : index
    %c112_48 = arith.constant 112 : index
    %120 = vector.load %arg9[%c0_47, %c112_48] : memref<12x512xf32, #tpu.memory_space<vmem>>, vector<12x256xf32>
    %c12 = arith.constant 12 : index
    %c0_49 = arith.constant 0 : index
    %121 = vector.load %arg10[%c12, %c0_49] : memref<108x256xf32, #tpu.memory_space<vmem>>, vector<12x256xf32>
    tpu.vector_store %arg10[%c12, %c0_49], %120 {strides = array<i32>} : memref<108x256xf32, #tpu.memory_space<vmem>>, vector<12x256xf32>,
    %c0_50 = arith.constant 0 : index
    %c113_51 = arith.constant 113 : index
    %122 = vector.load %arg9[%c0_50, %c113_51] : memref<12x512xf32, #tpu.memory_space<vmem>>, vector<12x256xf32>
    %123 = arith.mulf %122, %33 : vector<12x256xf32>
    %c24 = arith.constant 24 : index
    %c0_52 = arith.constant 0 : index
    %124 = vector.load %arg10[%c24, %c0_52] : memref<108x256xf32, #tpu.memory_space<vmem>>, vector<12x256xf32>
    tpu.vector_store %arg10[%c24, %c0_52], %123 {strides = array<i32>} : memref<108x256xf32, #tpu.memory_space<vmem>>, vector<12x256xf32>,
    %c0_53 = arith.constant 0 : index
    %c127_54 = arith.constant 127 : index
    %125 = vector.load %arg9[%c0_53, %c127_54] : memref<12x512xf32, #tpu.memory_space<vmem>>, vector<12x256xf32>
    %126 = arith.mulf %125, %30 : vector<12x256xf32>
    %c36 = arith.constant 36 : index
    %c0_55 = arith.constant 0 : index
    %127 = vector.load %arg10[%c36, %c0_55] : memref<108x256xf32, #tpu.memory_space<vmem>>, vector<12x256xf32>
    tpu.vector_store %arg10[%c36, %c0_55], %126 {strides = array<i32>} : memref<108x256xf32, #tpu.memory_space<vmem>>, vector<12x256xf32>,
    %c48 = arith.constant 48 : index
    %c0_56 = arith.constant 0 : index
    %128 = vector.load %arg10[%c48, %c0_56] : memref<108x256xf32, #tpu.memory_space<vmem>>, vector<12x256xf32>
    tpu.vector_store %arg10[%c48, %c0_56], %114 {strides = array<i32>} : memref<108x256xf32, #tpu.memory_space<vmem>>, vector<12x256xf32>,
    %c0_57 = arith.constant 0 : index
    %c129_58 = arith.constant 129 : index
    %129 = vector.load %arg9[%c0_57, %c129_58] : memref<12x512xf32, #tpu.memory_space<vmem>>, vector<12x256xf32>
    %130 = arith.mulf %129, %33 : vector<12x256xf32>
    %c60 = arith.constant 60 : index
    %c0_59 = arith.constant 0 : index
    %131 = vector.load %arg10[%c60, %c0_59] : memref<108x256xf32, #tpu.memory_space<vmem>>, vector<12x256xf32>
    tpu.vector_store %arg10[%c60, %c0_59], %130 {strides = array<i32>} : memref<108x256xf32, #tpu.memory_space<vmem>>, vector<12x256xf32>,
    %c0_60 = arith.constant 0 : index
    %c143_61 = arith.constant 143 : index
    %132 = vector.load %arg9[%c0_60, %c143_61] : memref<12x512xf32, #tpu.memory_space<vmem>>, vector<12x256xf32>
    %133 = arith.mulf %132, %30 : vector<12x256xf32>
    %c72 = arith.constant 72 : index
    %c0_62 = arith.constant 0 : index
    %134 = vector.load %arg10[%c72, %c0_62] : memref<108x256xf32, #tpu.memory_space<vmem>>, vector<12x256xf32>
    tpu.vector_store %arg10[%c72, %c0_62], %133 {strides = array<i32>} : memref<108x256xf32, #tpu.memory_space<vmem>>, vector<12x256xf32>,
    %c0_63 = arith.constant 0 : index
    %c144_64 = arith.constant 144 : index
    %135 = vector.load %arg9[%c0_63, %c144_64] : memref<12x512xf32, #tpu.memory_space<vmem>>, vector<12x256xf32>
    %c84 = arith.constant 84 : index
    %c0_65 = arith.constant 0 : index
    %136 = vector.load %arg10[%c84, %c0_65] : memref<108x256xf32, #tpu.memory_space<vmem>>, vector<12x256xf32>
    tpu.vector_store %arg10[%c84, %c0_65], %135 {strides = array<i32>} : memref<108x256xf32, #tpu.memory_space<vmem>>, vector<12x256xf32>,
    %c0_66 = arith.constant 0 : index
    %c145_67 = arith.constant 145 : index
    %137 = vector.load %arg9[%c0_66, %c145_67] : memref<12x512xf32, #tpu.memory_space<vmem>>, vector<12x256xf32>
    %138 = arith.mulf %137, %33 : vector<12x256xf32>
    %c96 = arith.constant 96 : index
    %c0_68 = arith.constant 0 : index
    %139 = vector.load %arg10[%c96, %c0_68] : memref<108x256xf32, #tpu.memory_space<vmem>>, vector<12x256xf32>
    tpu.vector_store %arg10[%c96, %c0_68], %138 {strides = array<i32>} : memref<108x256xf32, #tpu.memory_space<vmem>>, vector<12x256xf32>,
    %c0_69 = arith.constant 0 : index
    %c0_70 = arith.constant 0 : index
    %c0_71 = arith.constant 0 : index
    %140 = vector.load %arg4[%c0_69, %c0_70, %c0_71] : memref<3x12x108xf32, #tpu.memory_space<vmem>>, vector<1x12x108xf32>
    %141 = vector.shape_cast %140 : vector<1x12x108xf32> to vector<12x108xf32>
    %c0_72 = arith.constant 0 : index
    %c0_73 = arith.constant 0 : index
    %142 = vector.load %arg10[%c0_72, %c0_73] : memref<108x256xf32, #tpu.memory_space<vmem>>, vector<108x256xf32>
    %cst_74 = arith.constant dense<0.000000e+00> : vector<12x256xf32>
    %143 = tpu.matmul %141, %142, %cst_74 {dimension_numbers = #tpu.dot_dimension_numbers<[1], [0], [0], [1], [0, 0, 1, 1], [], []>} : vector<12x108xf32>, vector<108x256xf32>, vector<12x256xf32> -> vector<12x256xf32>
    %c0_75 = arith.constant 0 : index
    %c0_76 = arith.constant 0 : index
    %c0_77 = arith.constant 0 : index
    %144 = vector.load %arg5[%c0_75, %c0_76, %c0_77] : memref<3x12x1xf32, #tpu.memory_space<vmem>>, vector<1x12x1xf32>
    %145 = vector.shape_cast %144 : vector<1x12x1xf32> to vector<12x1xf32>
    %146 = vector.broadcast %145 : vector<12x1xf32> to vector<12x256xf32>
    %147 = arith.addf %143, %146 : vector<12x256xf32>
    %cst_78 = arith.constant 0.000000e+00 : f32
    %148 = vector.broadcast %cst_78 : f32 to vector<12x256xf32>
    %149 = arith.subf %148, %147 : vector<12x256xf32>
    %150 = math.exp %149 : vector<12x256xf32>
    %cst_79 = arith.constant 1.000000e+00 : f32
    %151 = vector.broadcast %cst_79 : f32 to vector<12x256xf32>
    %152 = arith.addf %151, %150 : vector<12x256xf32>
    %153 = tpu.reciprocal %152 {approx = true} : vector<12x256xf32> -> vector<12x256xf32>
    %154 = arith.mulf %147, %153 : vector<12x256xf32>
    %c0_80 = arith.constant 0 : index
    %c128_81 = arith.constant 128 : index
    %155 = vector.load %arg9[%c0_80, %c128_81] : memref<12x512xf32, #tpu.memory_space<vmem>>, vector<12x256xf32>
    tpu.vector_store %arg9[%c0_80, %c128_81], %154 {strides = array<i32>} : memref<12x512xf32, #tpu.memory_space<vmem>>, vector<12x256xf32>,
    %c0_82 = arith.constant 0 : index
    %c111_83 = arith.constant 111 : index
    %156 = vector.load %arg9[%c0_82, %c111_83] : memref<12x512xf32, #tpu.memory_space<vmem>>, vector<12x256xf32>
    %157 = arith.mulf %156, %30 : vector<12x256xf32>
    %c0_84 = arith.constant 0 : index
    %c0_85 = arith.constant 0 : index
    %158 = vector.load %arg10[%c0_84, %c0_85] : memref<108x256xf32, #tpu.memory_space<vmem>>, vector<12x256xf32>
    tpu.vector_store %arg10[%c0_84, %c0_85], %157 {strides = array<i32>} : memref<108x256xf32, #tpu.memory_space<vmem>>, vector<12x256xf32>,
    %c0_86 = arith.constant 0 : index
    %c112_87 = arith.constant 112 : index
    %159 = vector.load %arg9[%c0_86, %c112_87] : memref<12x512xf32, #tpu.memory_space<vmem>>, vector<12x256xf32>
    %c12_88 = arith.constant 12 : index
    %c0_89 = arith.constant 0 : index
    %160 = vector.load %arg10[%c12_88, %c0_89] : memref<108x256xf32, #tpu.memory_space<vmem>>, vector<12x256xf32>
    tpu.vector_store %arg10[%c12_88, %c0_89], %159 {strides = array<i32>} : memref<108x256xf32, #tpu.memory_space<vmem>>, vector<12x256xf32>,
    %c0_90 = arith.constant 0 : index
    %c113_91 = arith.constant 113 : index
    %161 = vector.load %arg9[%c0_90, %c113_91] : memref<12x512xf32, #tpu.memory_space<vmem>>, vector<12x256xf32>
    %162 = arith.mulf %161, %33 : vector<12x256xf32>
    %c24_92 = arith.constant 24 : index
    %c0_93 = arith.constant 0 : index
    %163 = vector.load %arg10[%c24_92, %c0_93] : memref<108x256xf32, #tpu.memory_space<vmem>>, vector<12x256xf32>
    tpu.vector_store %arg10[%c24_92, %c0_93], %162 {strides = array<i32>} : memref<108x256xf32, #tpu.memory_space<vmem>>, vector<12x256xf32>,
    %c0_94 = arith.constant 0 : index
    %c127_95 = arith.constant 127 : index
    %164 = vector.load %arg9[%c0_94, %c127_95] : memref<12x512xf32, #tpu.memory_space<vmem>>, vector<12x256xf32>
    %165 = arith.mulf %164, %30 : vector<12x256xf32>
    %c36_96 = arith.constant 36 : index
    %c0_97 = arith.constant 0 : index
    %166 = vector.load %arg10[%c36_96, %c0_97] : memref<108x256xf32, #tpu.memory_space<vmem>>, vector<12x256xf32>
    tpu.vector_store %arg10[%c36_96, %c0_97], %165 {strides = array<i32>} : memref<108x256xf32, #tpu.memory_space<vmem>>, vector<12x256xf32>,
    %c48_98 = arith.constant 48 : index
    %c0_99 = arith.constant 0 : index
    %167 = vector.load %arg10[%c48_98, %c0_99] : memref<108x256xf32, #tpu.memory_space<vmem>>, vector<12x256xf32>
    tpu.vector_store %arg10[%c48_98, %c0_99], %154 {strides = array<i32>} : memref<108x256xf32, #tpu.memory_space<vmem>>, vector<12x256xf32>,
    %c0_100 = arith.constant 0 : index
    %c129_101 = arith.constant 129 : index
    %168 = vector.load %arg9[%c0_100, %c129_101] : memref<12x512xf32, #tpu.memory_space<vmem>>, vector<12x256xf32>
    %169 = arith.mulf %168, %33 : vector<12x256xf32>
    %c60_102 = arith.constant 60 : index
    %c0_103 = arith.constant 0 : index
    %170 = vector.load %arg10[%c60_102, %c0_103] : memref<108x256xf32, #tpu.memory_space<vmem>>, vector<12x256xf32>
    tpu.vector_store %arg10[%c60_102, %c0_103], %169 {strides = array<i32>} : memref<108x256xf32, #tpu.memory_space<vmem>>, vector<12x256xf32>,
    %c0_104 = arith.constant 0 : index
    %c143_105 = arith.constant 143 : index
    %171 = vector.load %arg9[%c0_104, %c143_105] : memref<12x512xf32, #tpu.memory_space<vmem>>, vector<12x256xf32>
    %172 = arith.mulf %171, %30 : vector<12x256xf32>
    %c72_106 = arith.constant 72 : index
    %c0_107 = arith.constant 0 : index
    %173 = vector.load %arg10[%c72_106, %c0_107] : memref<108x256xf32, #tpu.memory_space<vmem>>, vector<12x256xf32>
    tpu.vector_store %arg10[%c72_106, %c0_107], %172 {strides = array<i32>} : memref<108x256xf32, #tpu.memory_space<vmem>>, vector<12x256xf32>,
    %c0_108 = arith.constant 0 : index
    %c144_109 = arith.constant 144 : index
    %174 = vector.load %arg9[%c0_108, %c144_109] : memref<12x512xf32, #tpu.memory_space<vmem>>, vector<12x256xf32>
    %c84_110 = arith.constant 84 : index
    %c0_111 = arith.constant 0 : index
    %175 = vector.load %arg10[%c84_110, %c0_111] : memref<108x256xf32, #tpu.memory_space<vmem>>, vector<12x256xf32>
    tpu.vector_store %arg10[%c84_110, %c0_111], %174 {strides = array<i32>} : memref<108x256xf32, #tpu.memory_space<vmem>>, vector<12x256xf32>,
    %c0_112 = arith.constant 0 : index
    %c145_113 = arith.constant 145 : index
    %176 = vector.load %arg9[%c0_112, %c145_113] : memref<12x512xf32, #tpu.memory_space<vmem>>, vector<12x256xf32>
    %177 = arith.mulf %176, %33 : vector<12x256xf32>
    %c96_114 = arith.constant 96 : index
    %c0_115 = arith.constant 0 : index
    %178 = vector.load %arg10[%c96_114, %c0_115] : memref<108x256xf32, #tpu.memory_space<vmem>>, vector<12x256xf32>
    tpu.vector_store %arg10[%c96_114, %c0_115], %177 {strides = array<i32>} : memref<108x256xf32, #tpu.memory_space<vmem>>, vector<12x256xf32>,
    %c1 = arith.constant 1 : index
    %c0_116 = arith.constant 0 : index
    %c0_117 = arith.constant 0 : index
    %179 = vector.load %arg4[%c1, %c0_116, %c0_117] : memref<3x12x108xf32, #tpu.memory_space<vmem>>, vector<1x12x108xf32>
    %180 = vector.shape_cast %179 : vector<1x12x108xf32> to vector<12x108xf32>
    %c0_118 = arith.constant 0 : index
    %c0_119 = arith.constant 0 : index
    %181 = vector.load %arg10[%c0_118, %c0_119] : memref<108x256xf32, #tpu.memory_space<vmem>>, vector<108x256xf32>
    %cst_120 = arith.constant dense<0.000000e+00> : vector<12x256xf32>
    %182 = tpu.matmul %180, %181, %cst_120 {dimension_numbers = #tpu.dot_dimension_numbers<[1], [0], [0], [1], [0, 0, 1, 1], [], []>} : vector<12x108xf32>, vector<108x256xf32>, vector<12x256xf32> -> vector<12x256xf32>
    %c1_121 = arith.constant 1 : index
    %c0_122 = arith.constant 0 : index
    %c0_123 = arith.constant 0 : index
    %183 = vector.load %arg5[%c1_121, %c0_122, %c0_123] : memref<3x12x1xf32, #tpu.memory_space<vmem>>, vector<1x12x1xf32>
    %184 = vector.shape_cast %183 : vector<1x12x1xf32> to vector<12x1xf32>
    %185 = vector.broadcast %184 : vector<12x1xf32> to vector<12x256xf32>
    %186 = arith.addf %182, %185 : vector<12x256xf32>
    %cst_124 = arith.constant 0.000000e+00 : f32
    %187 = vector.broadcast %cst_124 : f32 to vector<12x256xf32>
    %188 = arith.subf %187, %186 : vector<12x256xf32>
    %189 = math.exp %188 : vector<12x256xf32>
    %cst_125 = arith.constant 1.000000e+00 : f32
    %190 = vector.broadcast %cst_125 : f32 to vector<12x256xf32>
    %191 = arith.addf %190, %189 : vector<12x256xf32>
    %192 = tpu.reciprocal %191 {approx = true} : vector<12x256xf32> -> vector<12x256xf32>
    %193 = arith.mulf %186, %192 : vector<12x256xf32>
    %c0_126 = arith.constant 0 : index
    %c128_127 = arith.constant 128 : index
    %194 = vector.load %arg9[%c0_126, %c128_127] : memref<12x512xf32, #tpu.memory_space<vmem>>, vector<12x256xf32>
    tpu.vector_store %arg9[%c0_126, %c128_127], %193 {strides = array<i32>} : memref<12x512xf32, #tpu.memory_space<vmem>>, vector<12x256xf32>,
    %c0_128 = arith.constant 0 : index
    %c111_129 = arith.constant 111 : index
    %195 = vector.load %arg9[%c0_128, %c111_129] : memref<12x512xf32, #tpu.memory_space<vmem>>, vector<12x256xf32>
    %196 = arith.mulf %195, %30 : vector<12x256xf32>
    %c0_130 = arith.constant 0 : index
    %c0_131 = arith.constant 0 : index
    %197 = vector.load %arg10[%c0_130, %c0_131] : memref<108x256xf32, #tpu.memory_space<vmem>>, vector<12x256xf32>
    tpu.vector_store %arg10[%c0_130, %c0_131], %196 {strides = array<i32>} : memref<108x256xf32, #tpu.memory_space<vmem>>, vector<12x256xf32>,
    %c0_132 = arith.constant 0 : index
    %c112_133 = arith.constant 112 : index
    %198 = vector.load %arg9[%c0_132, %c112_133] : memref<12x512xf32, #tpu.memory_space<vmem>>, vector<12x256xf32>
    %c12_134 = arith.constant 12 : index
    %c0_135 = arith.constant 0 : index
    %199 = vector.load %arg10[%c12_134, %c0_135] : memref<108x256xf32, #tpu.memory_space<vmem>>, vector<12x256xf32>
    tpu.vector_store %arg10[%c12_134, %c0_135], %198 {strides = array<i32>} : memref<108x256xf32, #tpu.memory_space<vmem>>, vector<12x256xf32>,
    %c0_136 = arith.constant 0 : index
    %c113_137 = arith.constant 113 : index
    %200 = vector.load %arg9[%c0_136, %c113_137] : memref<12x512xf32, #tpu.memory_space<vmem>>, vector<12x256xf32>
    %201 = arith.mulf %200, %33 : vector<12x256xf32>
    %c24_138 = arith.constant 24 : index
    %c0_139 = arith.constant 0 : index
    %202 = vector.load %arg10[%c24_138, %c0_139] : memref<108x256xf32, #tpu.memory_space<vmem>>, vector<12x256xf32>
    tpu.vector_store %arg10[%c24_138, %c0_139], %201 {strides = array<i32>} : memref<108x256xf32, #tpu.memory_space<vmem>>, vector<12x256xf32>,
    %c0_140 = arith.constant 0 : index
    %c127_141 = arith.constant 127 : index
    %203 = vector.load %arg9[%c0_140, %c127_141] : memref<12x512xf32, #tpu.memory_space<vmem>>, vector<12x256xf32>
    %204 = arith.mulf %203, %30 : vector<12x256xf32>
    %c36_142 = arith.constant 36 : index
    %c0_143 = arith.constant 0 : index
    %205 = vector.load %arg10[%c36_142, %c0_143] : memref<108x256xf32, #tpu.memory_space<vmem>>, vector<12x256xf32>
    tpu.vector_store %arg10[%c36_142, %c0_143], %204 {strides = array<i32>} : memref<108x256xf32, #tpu.memory_space<vmem>>, vector<12x256xf32>,
    %c48_144 = arith.constant 48 : index
    %c0_145 = arith.constant 0 : index
    %206 = vector.load %arg10[%c48_144, %c0_145] : memref<108x256xf32, #tpu.memory_space<vmem>>, vector<12x256xf32>
    tpu.vector_store %arg10[%c48_144, %c0_145], %193 {strides = array<i32>} : memref<108x256xf32, #tpu.memory_space<vmem>>, vector<12x256xf32>,
    %c0_146 = arith.constant 0 : index
    %c129_147 = arith.constant 129 : index
    %207 = vector.load %arg9[%c0_146, %c129_147] : memref<12x512xf32, #tpu.memory_space<vmem>>, vector<12x256xf32>
    %208 = arith.mulf %207, %33 : vector<12x256xf32>
    %c60_148 = arith.constant 60 : index
    %c0_149 = arith.constant 0 : index
    %209 = vector.load %arg10[%c60_148, %c0_149] : memref<108x256xf32, #tpu.memory_space<vmem>>, vector<12x256xf32>
    tpu.vector_store %arg10[%c60_148, %c0_149], %208 {strides = array<i32>} : memref<108x256xf32, #tpu.memory_space<vmem>>, vector<12x256xf32>,
    %c0_150 = arith.constant 0 : index
    %c143_151 = arith.constant 143 : index
    %210 = vector.load %arg9[%c0_150, %c143_151] : memref<12x512xf32, #tpu.memory_space<vmem>>, vector<12x256xf32>
    %211 = arith.mulf %210, %30 : vector<12x256xf32>
    %c72_152 = arith.constant 72 : index
    %c0_153 = arith.constant 0 : index
    %212 = vector.load %arg10[%c72_152, %c0_153] : memref<108x256xf32, #tpu.memory_space<vmem>>, vector<12x256xf32>
    tpu.vector_store %arg10[%c72_152, %c0_153], %211 {strides = array<i32>} : memref<108x256xf32, #tpu.memory_space<vmem>>, vector<12x256xf32>,
    %c0_154 = arith.constant 0 : index
    %c144_155 = arith.constant 144 : index
    %213 = vector.load %arg9[%c0_154, %c144_155] : memref<12x512xf32, #tpu.memory_space<vmem>>, vector<12x256xf32>
    %c84_156 = arith.constant 84 : index
    %c0_157 = arith.constant 0 : index
    %214 = vector.load %arg10[%c84_156, %c0_157] : memref<108x256xf32, #tpu.memory_space<vmem>>, vector<12x256xf32>
    tpu.vector_store %arg10[%c84_156, %c0_157], %213 {strides = array<i32>} : memref<108x256xf32, #tpu.memory_space<vmem>>, vector<12x256xf32>,
    %c0_158 = arith.constant 0 : index
    %c145_159 = arith.constant 145 : index
    %215 = vector.load %arg9[%c0_158, %c145_159] : memref<12x512xf32, #tpu.memory_space<vmem>>, vector<12x256xf32>
    %216 = arith.mulf %215, %33 : vector<12x256xf32>
    %c96_160 = arith.constant 96 : index
    %c0_161 = arith.constant 0 : index
    %217 = vector.load %arg10[%c96_160, %c0_161] : memref<108x256xf32, #tpu.memory_space<vmem>>, vector<12x256xf32>
    tpu.vector_store %arg10[%c96_160, %c0_161], %216 {strides = array<i32>} : memref<108x256xf32, #tpu.memory_space<vmem>>, vector<12x256xf32>,
    %c2 = arith.constant 2 : index
    %c0_162 = arith.constant 0 : index
    %c0_163 = arith.constant 0 : index
    %218 = vector.load %arg4[%c2, %c0_162, %c0_163] : memref<3x12x108xf32, #tpu.memory_space<vmem>>, vector<1x12x108xf32>
    %219 = vector.shape_cast %218 : vector<1x12x108xf32> to vector<12x108xf32>
    %c0_164 = arith.constant 0 : index
    %c0_165 = arith.constant 0 : index
    %220 = vector.load %arg10[%c0_164, %c0_165] : memref<108x256xf32, #tpu.memory_space<vmem>>, vector<108x256xf32>
    %cst_166 = arith.constant dense<0.000000e+00> : vector<12x256xf32>
    %221 = tpu.matmul %219, %220, %cst_166 {dimension_numbers = #tpu.dot_dimension_numbers<[1], [0], [0], [1], [0, 0, 1, 1], [], []>} : vector<12x108xf32>, vector<108x256xf32>, vector<12x256xf32> -> vector<12x256xf32>
    %c2_167 = arith.constant 2 : index
    %c0_168 = arith.constant 0 : index
    %c0_169 = arith.constant 0 : index
    %222 = vector.load %arg5[%c2_167, %c0_168, %c0_169] : memref<3x12x1xf32, #tpu.memory_space<vmem>>, vector<1x12x1xf32>
    %223 = vector.shape_cast %222 : vector<1x12x1xf32> to vector<12x1xf32>
    %224 = vector.broadcast %223 : vector<12x1xf32> to vector<12x256xf32>
    %225 = arith.addf %221, %224 : vector<12x256xf32>
    %cst_170 = arith.constant 0.000000e+00 : f32
    %226 = vector.broadcast %cst_170 : f32 to vector<12x256xf32>
    %227 = arith.subf %226, %225 : vector<12x256xf32>
    %228 = math.exp %227 : vector<12x256xf32>
    %cst_171 = arith.constant 1.000000e+00 : f32
    %229 = vector.broadcast %cst_171 : f32 to vector<12x256xf32>
    %230 = arith.addf %229, %228 : vector<12x256xf32>
    %231 = tpu.reciprocal %230 {approx = true} : vector<12x256xf32> -> vector<12x256xf32>
    %232 = arith.mulf %225, %231 : vector<12x256xf32>
    %c0_172 = arith.constant 0 : index
    %c0_173 = arith.constant 0 : index
    %233 = vector.load %arg6[%c0_172, %c0_173] : memref<3x12xf32, #tpu.memory_space<vmem>>, vector<3x12xf32>
    %234 = arith.addf %232, %115 : vector<12x256xf32>
    %cst_174 = arith.constant dense<0.000000e+00> : vector<3x256xf32>
    %235 = tpu.matmul %233, %234, %cst_174 {dimension_numbers = #tpu.dot_dimension_numbers<[1], [0], [0], [1], [0, 0, 1, 1], [], []>} : vector<3x12xf32>, vector<12x256xf32>, vector<3x256xf32> -> vector<3x256xf32>
    %c0_175 = arith.constant 0 : index
    %c0_176 = arith.constant 0 : index
    %236 = vector.load %arg7[%c0_175, %c0_176] : memref<3x1xf32, #tpu.memory_space<vmem>>, vector<3x1xf32>
    %237 = vector.broadcast %236 : vector<3x1xf32> to vector<3x256xf32>
    %238 = arith.addf %235, %237 : vector<3x256xf32>
    %cst_177 = arith.constant 0.000000e+00 : f32
    %239 = vector.broadcast %cst_177 : f32 to vector<3x256xf32>
    %240 = arith.subf %239, %238 : vector<3x256xf32>
    %241 = math.exp %240 : vector<3x256xf32>
    %cst_178 = arith.constant 1.000000e+00 : f32
    %242 = vector.broadcast %cst_178 : f32 to vector<3x256xf32>
    %243 = arith.addf %242, %241 : vector<3x256xf32>
    %244 = tpu.reciprocal %243 {approx = true} : vector<3x256xf32> -> vector<3x256xf32>
    %245 = arith.mulf %238, %244 : vector<3x256xf32>
    %246 = arith.addf %245, %1 : vector<3x256xf32>
    %c0_179 = arith.constant 0 : index
    %c0_180 = arith.constant 0 : index
    %c0_181 = arith.constant 0 : index
    %247 = vector.load %arg8[%c0_179, %c0_180, %c0_181] : memref<1x3x256xf32, #tpu.memory_space<vmem>>, vector<1x3x256xf32>
    %248 = vector.shape_cast %247 : vector<1x3x256xf32> to vector<3x256xf32>
    %249 = vector.shape_cast %246 : vector<3x256xf32> to vector<1x3x256xf32>
    tpu.vector_store %arg8[%c0_179, %c0_180, %c0_181], %249 {strides = array<i32>} : memref<1x3x256xf32, #tpu.memory_space<vmem>>, vector<1x3x256xf32>,
    return
  }
  func.func @transform_0(%arg0: i32) -> (i32, i32, i32) {
    %c0_i32 = arith.constant 0 : i32
    %c0_i32_0 = arith.constant 0 : i32
    %c0_i32_1 = arith.constant 0 : i32
    return %arg0, %c0_i32, %c0_i32_0 : i32, i32, i32
  }
  func.func @transform_1(%arg0: i32) -> (i32, i32) {
    %c0_i32 = arith.constant 0 : i32
    %c0_i32_0 = arith.constant 0 : i32
    %c0_i32_1 = arith.constant 0 : i32
    return %c0_i32, %c0_i32_0 : i32, i32
  }
  func.func @transform_2(%arg0: i32) -> (i32, i32) {
    %c0_i32 = arith.constant 0 : i32
    %c0_i32_0 = arith.constant 0 : i32
    %c0_i32_1 = arith.constant 0 : i32
    return %c0_i32, %c0_i32_0 : i32, i32
  }
  func.func @transform_3(%arg0: i32) -> (i32, i32, i32) {
    %c0_i32 = arith.constant 0 : i32
    %c0_i32_0 = arith.constant 0 : i32
    %c0_i32_1 = arith.constant 0 : i32
    %c0_i32_2 = arith.constant 0 : i32
    return %c0_i32, %c0_i32_0, %c0_i32_1 : i32, i32, i32
  }
  func.func @transform_4(%arg0: i32) -> (i32, i32, i32) {
    %c0_i32 = arith.constant 0 : i32
    %c0_i32_0 = arith.constant 0 : i32
    %c0_i32_1 = arith.constant 0 : i32
    %c0_i32_2 = arith.constant 0 : i32
    return %c0_i32, %c0_i32_0, %c0_i32_1 : i32, i32, i32
  }
  func.func @transform_5(%arg0: i32) -> (i32, i32) {
    %c0_i32 = arith.constant 0 : i32
    %c0_i32_0 = arith.constant 0 : i32
    %c0_i32_1 = arith.constant 0 : i32
    return %c0_i32, %c0_i32_0 : i32, i32
  }
  func.func @transform_6(%arg0: i32) -> (i32, i32) {
    %c0_i32 = arith.constant 0 : i32
    %c0_i32_0 = arith.constant 0 : i32
    %c0_i32_1 = arith.constant 0 : i32
    return %c0_i32, %c0_i32_0 : i32, i32
  }
  func.func @transform_7(%arg0: i32) -> (i32, i32, i32) {
    %c0_i32 = arith.constant 0 : i32
    %c0_i32_0 = arith.constant 0 : i32
    %c0_i32_1 = arith.constant 0 : i32
    return %arg0, %c0_i32, %c0_i32_0 : i32, i32, i32
  }
}

</mosaic_0001>

<bundles_post_ra>
// kernel: edge_csp_layer_forward.1
= control target key start
LH: loop header
LB: loop body
LE: loop exit
PB: predicated region body
PF: predicated region fallthrough
CT: control target
= control target key end

     0   :  { %s2842_s24 = smov 0   ;;  %s3810_s0 = inlined_call_operand.vmem [shape: f32[2,3,256], index: 0, kind: input, shape index: {}]   ;;  %s3811_s1 = inlined_call_operand.vmem [shape: f32[24,4], index: 1, kind: input, shape index: {}]   ;;  %s3812_s2 = inlined_call_operand.vmem [shape: f32[24,1], index: 2, kind: input, shape index: {}]   ;;  %s3813_s3 = inlined_call_operand.vmem [shape: f32[3,12,108], index: 3, kind: input, shape index: {}]   ;;  %s3814_s4 = inlined_call_operand.vmem [shape: f32[3,12,1], index: 4, kind: input, shape index: {}]   ;;  %s3815_s5 = inlined_call_operand.vmem [shape: f32[3,12], index: 5, kind: input, shape index: {}]   ;;  %s3816_s6 = inlined_call_operand.vmem [shape: f32[3,1], index: 6, kind: input, shape index: {}]   ;;  %s3817_s7 = inlined_call_operand.vmem [shape: f32[2,3,256], index: 7, kind: output, shape index: {}]  }
   0x1 LB: > { %s2556_s25 = sadd.s32 4294967295, %s2783_s24   ;;  %p2560_p0 = scmp.ge.s32.totalorder %s2783_s24, 1  ;;  %s2783_s24 = sphi %s2842_s24, %s17_s24  }
   0x2   : > { %p237_p1 = scmp.lt.s32.totalorder %s2783_s24, 3 }
   0x4   : > { %p238_p2 = pnand %p2560_p0, %p237_p1 }
   0x5   : > { %p269_p3 = scmp.lt.s32.totalorder (!%p238_p2), %s2556_s25, 1  ;;  %s2787_s30 = smov (!%p238_p2), 1  }
   0x6   : > { %241 = sbr.rel (%p238_p2) target bundleno = 1995 (0x7cb), region = 48  ;;  %s2788_s8 = smov (!%p238_p2), 113  }
   0x7   : > { %s2789_s9 = smov (!%p238_p2), 15   ;;  %s2790_s10 = smov (!%p238_p2), 127  }
   0x8   : > { %s2792_s11 = smov (!%p238_p2), 17   ;;  %s2793_s12 = smov (!%p238_p2), 111  }
   0x9   : > { %s2794_s17 = smov (!%p238_p2), 126   ;;  %s2795_s18 = smov (!%p238_p2), 96  }
   0xa   : > { %s2796_s19 = smov (!%p238_p2), 110   ;;  %s2797_s20 = smov (!%p238_p2), 112  }
   0xb   : > { %v280_v0 = vlaneseq  ;;  %v2785_v1 = vmov 1966171168   ;;  %v2786_v3 = vmov 0.0   ;;  %s3819_s25 = smov (!%p269_p3, %s2556_s25), 1  ;;  %v2791_v26 = vmov 3   ;;  %v513_v29 = vld [vmem:[%s3811_s1] sm:$0xff] }
   0xc   : > { %v325_v2 = vunpack.c.l.s4 %v2785_v1  ;;  %319 = vst [vmem:[#allocation2] sm:$0xff] %v2786_v3  ;;  %320 = vst [vmem:[#allocation2 + $0x20] sm:$0xf] %v2786_v3  ;;  %672 = vmatprep.mubr.f32.mxu0 %v2786_v3  ;;  %1288 = vmatprep.mubr.f32.mxu1 %v2786_v3  ;;  %s2599_s26 = sshll.u32 %s3819_s25, 3  ;;  %vm603_vm5 = vcmask 1042432   ;;  %vm596_vm6 = vcmask 23552  }
   0xd   : > { %321 = vst [vmem:[#allocation2 + $0x18] sm:$0xff] %v2786_v3  ;;  %322 = vst [vmem:[#allocation2 + $0x38] sm:$0xf] %v2786_v3  ;;  %v281_v4 = vand.u32 127, %v280_v0  ;;  %v2856_v5 = vshrl.u32 %v280_v0, 7  ;;  %s2867_s29 = scalar_lea.vmem %s3810_s0, %s2599_s26  ;;  %vm342_vm4 = vcmp.lt.s32.totalorder %v280_v0, 256  ;;  %2627 = vset.pattern.permute.xlu0 %v2791_v26  ;;  %2626 = vset.pattern.permute.xlu1 %v2791_v26 }
   0xe   : > { %v326_v6 = vunpack.c.0.s8 %v325_v2  ;;  %v279_v11 = vld [vmem:[%s2867_s29] sm:$0x77]  ;;  %v514_v30 = vld [vmem:[%s3811_s1 + $0x8] sm:$0xff]  ;;  %vm442_vm7 = vcmask 7168   ;;  %vm403_vm8 = vcmask 924672   ;;  %vm458_vm9 = vcmask 121856  }
   0xf   : > { %v282_v7 = vadd.s32 128, %v281_v4  ;;  %v287_v8 = vand.u32 15, %v281_v4  ;;  %v2897_v28 = vcombine.high %v279_v11, %v279_v11  ;;  %vm379_vm10 = vcmask 1039360   ;;  %s2798_s21 = smov 95   ;;  %s2799_s22 = smov 94   ;;  %v692_v57 = vld [vmem:[%s3812_s2 + $0x8] sm:$0xff] }
  0x10   : > { %v329_v9 = vsub.s32 %v326_v6, %v2856_v5  ;;  %vm490_vm11 = vcmask 138240   ;;  %v2800_v58 = vmov 0   ;;  %v691_v59 = vld [vmem:[%s3812_s2] sm:$0xff]  ;;  %vm368_vm12 = vcmask 908288   ;;  %s2801_s14 = smov 16  }
  0x11   : > { %v294_v10 = vand.u32 15, %v282_v7  ;;  %vm313_vm0 = vcmp.le.s32.totalorder %v287_v8, 14  ;;  %vm307_vm1 = vcmp.ge.s32.totalorder %v287_v8, 1  ;;  %2569 = vmatprep.subr.msk.mxu0 %vm603_vm5, %v2897_v28  ;;  %vm412_vm13 = vcmask 1031168  }
  0x12   : > { %v2871_v12 = vsel %vm313_vm0, 1.0, %v2786_v3  ;;  %v330_v13 = vrot.slane %v279_v11, %v329_v9  ;;  %v2874_v14 = vsel %vm307_vm1, 1.0, %v2786_v3  ;;  %2570 = vmatpush1.msk.msra.mxu0 %vm603_vm5, %v279_v11  ;;  %vm466_vm14 = vcmask 785408  }
  0x13   : > { %vm314_vm2 = vcmp.le.s32.totalorder %v294_v10, 14  ;;  %vm308_vm3 = vcmp.ge.s32.totalorder %v294_v10, 1  ;;  %2571 = vmatmul.mubr.msk.f32.vlgmr.msra.gmra.mxu0 %vm596_vm6, %v513_v29  ;;  %vm434_vm15 = vcmask 916480   ;;  %vm451_vm0 = vcmask 900096  }
  0x14   : > { %v2877_v15 = vsel %vm314_vm2, 1.0, %v2786_v3  ;;  %v337_v16 = vrot.slane %v330_v13, %v329_v9  ;;  %v2880_v17 = vsel %vm308_vm3, 1.0, %v2786_v3  ;;  %678 = vmatprep.mubr.f32.mxu0 %v2786_v3  ;;  %vm483_vm1 = vcmask 777216  }
  0x15   : > { %v385_v18 = vcombine.low %v2871_v12, %v2877_v15  ;;  %v350_v19 = vcombine.low %v2874_v14, %v2880_v17  ;;  %vm498_vm2 = vcmask 769024   ;;  %vm817_vm5 = vcmask 1043456  }
  0x16   : > { %v338_v20 = vcombine.high %v337_v16, %v337_v16 }
  0x17   : > { %v392_v21 = vrot.slane %v385_v18, %v329_v9  ;;  %v357_v22 = vrot.slane %v350_v19, %v329_v9  ;;  %2572 = vmatmul.mubr.msk.f32.gmra.mxu0 %vm596_vm6, %v514_v30 }
  0x18   : > { %345 = vst.msk [vmem:[#allocation2 + $0x8] ss:$8 sm:$0x3] %vm342_vm4, %v338_v20  ;;  %684 = vmatprep.mubr.f32.mxu0 %v2786_v3 }
  0x19   : > { %v399_v23 = vrot.slane %v392_v21, %v329_v9  ;;  %v364_v24 = vrot.slane %v357_v22, %v329_v9 }
  0x1b   : > { %439 = vrot.lane.b32.xlu1 %v399_v23, %s2787_s30  ;;  %400 = vrot.lane.b32.xlu0 %v399_v23, %s2788_s8 }
  0x1f   : > { %455 = vrot.lane.b32.xlu1 %v364_v24, %s2789_s9  ;;  %423 = vrot.lane.b32.xlu0 %v364_v24, %s2790_s10  ;;  %v2890_v25 = vld [vmem:[#allocation2] ss:$8 sm:$0x7] }
  0x20   : > { %v374_v27 = vmul.f32 -2.0, %v2890_v25  ;;  %v438_v37 = vld [vmem:[#allocation2 + $0x8] ss:$8 sm:$0x7] }
  0x21   : > { %v478_v54 = vmul.f32 2.0, %v438_v37 }
  0x23   : > { %487 = vrot.lane.b32.xlu0 %v399_v23, %s2792_s11  ;;  %365 = vrot.lane.b32.xlu1 %v364_v24, %s2793_s12 }
  0x27   : > { %376 = vrot.lane.b32.xlu0 %v374_v27, %s2790_s10 }
  0x8d   : > { %v440_v31 = vpop.permute.xlu1 %439  ;;  %v401_v32 = vpop.permute.xlu0 %400 }
  0x8e   : > { %v441_v33 = vrot.slane %v440_v31, 7  ;;  %v402_v34 = vrot.slane %v401_v32, 7 }
  0x90   : > { %v443_v35 = vsel %vm442_vm7, %v441_v33, %v440_v31  ;;  %v404_v36 = vsel %vm403_vm8, %v402_v34, %v401_v32 }
  0x91   : > { %v456_v38 = vpop.permute.xlu1 %455  ;;  %v424_v39 = vpop.permute.xlu0 %423  ;;  %v406_v40 = vmul.f32 %v404_v36, %v2890_v25  ;;  %v445_v44 = vmul.f32 %v443_v35, %v438_v37 }
  0x92   : > { %v457_v41 = vrot.slane %v456_v38, 7  ;;  %v425_v42 = vrot.slane %v424_v39, 7 }
  0x93   : > { %417 = vrot.lane.b32.xlu1 %v406_v40, %s2794_s17  ;;  %v407_v43 = vmul.f32 -1.0, %v406_v40  ;;  %v446_v50 = vmul.f32 2.0, %v445_v44 }
  0x94   : > { %v459_v45 = vsel %vm458_vm9, %v457_v41, %v456_v38  ;;  %v426_v46 = vsel %vm379_vm10, %v425_v42, %v424_v39 }
  0x95   : > { %409 = vrot.lane.b32.xlu0 %v407_v43, %s2794_s17  ;;  %v461_v47 = vmul.f32 %v459_v45, %v438_v37  ;;  %v488_v48 = vpop.permute.xlu0 %487  ;;  %v428_v49 = vmul.f32 %v426_v46, %v2890_v25  ;;  %v366_v60 = vpop.permute.xlu1 %365 }
  0x96   : > { %v489_v51 = vrot.slane %v488_v48, 7  ;;  %v367_v61 = vrot.slane %v366_v60, 7 }
  0x97   : > { %463 = vrot.lane.b32.xlu1 %v461_v47, %s2795_s18  ;;  %v429_v52 = vmul.f32 -2.0, %v428_v49  ;;  %v470_v53 = vmul.f32 -1.0, %v461_v47 }
  0x98   : > { %v491_v55 = vsel %vm490_vm11, %v489_v51, %v488_v48  ;;  %v369_v62 = vsel %vm368_vm12, %v367_v61, %v366_v60  ;;  %v542_v51 = vsub.s32 2, %v2856_v5 }
  0x99   : > { %448 = vrot.lane.b32.xlu0 %v446_v50, %s2796_s19  ;;  %v493_v56 = vmul.f32 %v491_v55, %v438_v37  ;;  %v377_v63 = vpop.permute.xlu0 %376  ;;  %v371_v0 = vmul.f32 %v369_v62, %v2890_v25  ;;  %v534_v55 = vsub.s32 0, %v2856_v5  ;;  %s278_s19 = scalar_lea.vmem %s3817_s7, %s2599_s26 }
  0x9a   : > { %v378_v2 = vrot.slane %v377_v63, 1 }
  0x9b   : > { %431 = vrot.lane.b32.xlu1 %v429_v52, %s2797_s20  ;;  %v372_v8 = vmul.f32 -1.0, %v371_v0  ;;  %v538_v52 = vsub.s32 1, %v2856_v5 }
  0x9c   : > { %v380_v10 = vsel %vm379_vm10, %v377_v63, %v378_v2 }
  0x9d   : > { %472 = vrot.lane.b32.xlu0 %v470_v53, %s2795_s18  ;;  %v382_v19 = vadd.f32 %v380_v10, %v372_v8 }
  0x9f   : > { %480 = vrot.lane.b32.xlu1 %v478_v54, %s2798_s21 }
  0xa1   : > { %495 = vrot.lane.b32.xlu0 %v493_v56, %s2799_s22 }
  0xa3   : > { %523 = vperm.xlu1 %2626, %v514_v30  }
  0xa5   : > { %518 = vperm.xlu0 %2627, %v513_v29  }
  0xa7   : > { %2628 = vset.pattern.permute.xlu1 %v2800_v58 }
  0xa8   : > { %701 = vperm.xlu1 %2628, %v692_v57  }
  0xa9   : > { %2669 = vset.pattern.permute.xlu0 %v2800_v58 }
  0xac   : > { %696 = vperm.xlu1 %2628, %v691_v59  }
 0x105   : > { %v418_v1 = vpop.permute.xlu1 %417 }
 0x106   : > { %v419_v6 = vrot.slane %v418_v1, 1 }
 0x107   : > { %v410_v4 = vpop.permute.xlu0 %409 }
 0x108   : > { %v411_v7 = vrot.slane %v410_v4, 1  ;;  %v420_v13 = vsel %vm412_vm13, %v418_v1, %v419_v6  ;;  %v2629_v6 = vpack.i.bf16 %v2877_v15, %v2871_v12 }
 0x109   : > { %v464_v9 = vpop.permute.xlu1 %463  ;;  %v422_v23 = vadd.f32 %v420_v13, %v372_v8  ;;  %v674_v8 = vpop.f32.mrf.mxu0 }
 0x10a   : > { %v413_v16 = vsel %vm412_vm13, %v410_v4, %v411_v7  ;;  %v465_v18 = vrot.slane %v464_v9, 7  ;;  %v2634_v7 = vpack.i.bf16 %v2880_v17, %v2874_v14  ;;  %vm839_vm13 = vcmask 130048  }
 0x10b   : > { %v449_v11 = vpop.permute.xlu0 %448  ;;  %v415_v24 = vadd.f32 %v413_v16, %v382_v19  ;;  %v676_v10 = vpop.f32.mrf.mxu0 }
 0x10c   : > { %v450_v21 = vrot.slane %v449_v11, 7  ;;  %v467_v27 = vsel %vm466_vm14, %v465_v18, %v464_v9 }
 0x10d   : > { %v432_v20 = vpop.permute.xlu1 %431  ;;  %v469_v35 = vadd.f32 %v467_v27, %v415_v24  ;;  %v680_v12 = vpop.f32.mrf.mxu0  ;;  %v1079_v24 = vld [vmem:[#allocation2 + $0x38] sm:$0xf] }
 0x10e   : > { %v433_v22 = vrot.slane %v432_v20, 1  ;;  %v452_v33 = vsel %vm451_vm0, %v450_v21, %v449_v11 }
 0x10f   : > { %v473_v25 = vpop.permute.xlu0 %472  ;;  %v682_v14 = vpop.f32.mrf.mxu0 }
 0x110   : > { %v435_v29 = vsel %vm434_vm15, %v432_v20, %v433_v22  ;;  %v474_v30 = vrot.slane %v473_v25, 7 }
 0x111   : > { %v437_v31 = vadd.f32 %v435_v29, %v422_v23  ;;  %v481_v32 = vpop.permute.xlu1 %480 }
 0x112   : > { %v482_v34 = vrot.slane %v481_v32, 7  ;;  %v475_v38 = vsel %vm466_vm14, %v474_v30, %v473_v25  ;;  %vm1211_vm14 = vcmask 883712  }
 0x113   : > { %v454_v36 = vadd.f32 %v452_v33, %v437_v31  ;;  %v496_v37 = vpop.permute.xlu0 %495  ;;  %v2974_v33 = vrot.slane %v2786_v3, 4 }
 0x114   : > { %v484_v39 = vsel %vm483_vm1, %v482_v34, %v481_v32  ;;  %v497_v40 = vrot.slane %v496_v37, 7  ;;  %v1093_v34 = vrot.slane %v1079_v24, 4 }
 0x115   : > { %v477_v41 = vadd.f32 %v475_v38, %v454_v36  ;;  %v486_v42 = vadd.f32 %v484_v39, %v469_v35 }
 0x116   : > { %v499_v43 = vsel %vm498_vm2, %v497_v40, %v496_v37 }
 0x117   : > { %v501_v44 = vadd.f32 %v499_v43, %v486_v42  ;;  %v502_v45 = vadd.f32 %v499_v43, %v477_v41  ;;  %v1124_v42 = vld [vmem:[#allocation2 + $0x38] sm:$0xf] }
 0x119   : > { %v503_v46 = vmul.f32 %v501_v44, %v501_v44  ;;  %v504_v47 = vmul.f32 %v502_v45, %v502_v45 }
 0x11b   : > { %v505_v48 = vadd.f32 %v504_v47, %v503_v46  ;;  %v1094_v47 = vsel %vm817_vm5, %v2974_v33, %v1093_v34 }
 0x11d   : > { %2692 = vrsqrt.f32 %v505_v48  ;;  %vm508_vm3 = vcmp.eq.f32.partialorder %v505_v48, inf  ;;  %v511_v53 = vand.u32 2147483648, %v505_v48  ;;  %vm510_vm4 = vcmp.eq.f32.partialorder %v505_v48, 0.0 }
 0x11e   : > { %v524_v56 = vpop.permute.xlu1 %523 }
 0x120   : > { %v519_v0 = vpop.permute.xlu0 %518 }
 0x123   : > { %v702_v9 = vpop.permute.xlu1 %701 }
 0x127   : > { %v697_v11 = vpop.permute.xlu1 %696 }
 0x12a   : > { %v2693_v49 = vpop.eup %2692 }
 0x12b   : > { %v507_v50 = vmul.f32 %v2693_v49, %v505_v48 }
 0x12d   : > { %v509_v54 = vsel %vm508_vm3, %v505_v48, %v507_v50  ;;  %v1029_v48 = vld [vmem:[#allocation2 + $0x38] sm:$0xf] }
 0x12e   : > { %v512_v57 = vsel %vm510_vm4, %v511_v53, %v509_v54 }
 0x12f   : > { %v2936_v59 = vrot.slane %v512_v57, %v542_v51  ;;  %v2938_v60 = vrot.slane %v512_v57, %v538_v52  ;;  %v2942_v63 = vrot.slane %v512_v57, %v534_v55  ;;  %v970_v55 = vld [vmem:[#allocation2 + $0x38] sm:$0xf]  ;;  %v2659_v57 = vpack.i.bf16 %v2974_v33, %v1094_v47 }
 0x131   : > { %v552_v61 = vmul.f32 %v2936_v59, %v524_v56  ;;  %v551_v62 = vmul.f32 %v2938_v60, %v524_v56  ;;  %v548_v1 = vmul.f32 %v2938_v60, %v519_v0  ;;  %v550_v5 = vmul.f32 %v2942_v63, %v524_v56 }
 0x132   : > { %v549_v2 = vmul.f32 %v2936_v59, %v519_v0  ;;  %v547_v4 = vmul.f32 %v2942_v63, %v519_v0 }
 0x133   : > { %576 = vrot.lane.b32.xlu0 %v552_v61, %s2792_s11  ;;  %574 = vrot.lane.b32.xlu1 %v551_v62, %s2792_s11 }
 0x137   : > { %568 = vrot.lane.b32.xlu1 %v548_v1, %s2792_s11  ;;  %572 = vrot.lane.b32.xlu0 %v550_v5, %s2792_s11  ;;  %v905_v5 = vld [vmem:[#allocation2 + $0x20] sm:$0xf] }
 0x13b   : > { %570 = vrot.lane.b32.xlu0 %v549_v2, %s2792_s11  ;;  %566 = vrot.lane.b32.xlu1 %v547_v4, %s2792_s11 }
 0x13f   : > { %2630 = vrot.lane.b32.xlu0 %v2629_v6, %s2792_s11  ;;  %2635 = vrot.lane.b32.xlu1 %v2634_v7, %s2789_s9 }
 0x143   : > { %2640 = vrot.lane.b32.xlu0 %v2629_v6, %s2787_s30  ;;  %2645 = vrot.lane.b32.xlu1 %v2634_v7, %s2790_s10 }
 0x147   : > { %2650 = vrot.lane.b32.xlu0 %v2629_v6, %s2788_s8  ;;  %2655 = vrot.lane.b32.xlu1 %v2634_v7, %s2793_s12 }
 0x1a5   : > { %v577_v15 = vpop.permute.xlu0 %576  ;;  %v575_v13 = vpop.permute.xlu1 %574 }
 0x1a6   : > { %v587_v17 = vsel %vm490_vm11, %v575_v13, %v577_v15 }
 0x1a7   : > { %v683_v16 = vadd.f32 %v682_v14, %v587_v17 }
 0x1a9   : > { %v2965_v18 = vadd.f32 %v702_v9, %v683_v16  ;;  %v569_v19 = vpop.permute.xlu1 %568  ;;  %v573_v20 = vpop.permute.xlu0 %572 }
 0x1aa   : > { %v586_v21 = vsel %vm490_vm11, %v573_v20, %v575_v13  ;;  %v808_v20 = vld [vmem:[#allocation2 + $0x20] sm:$0xf] }
 0x1ab   : > { %v718_v22 = vsub.f32 0.0, %v2965_v18  ;;  %v681_v23 = vadd.f32 %v680_v12, %v586_v21  ;;  %v821_v24 = vrot.slane %v808_v20, 4 }
 0x1ad   : > { %v727_v25 = vmul.f32 1.442695, %v718_v22  ;;  %v2969_v27 = vadd.f32 %v702_v9, %v681_v23  ;;  %v571_v29 = vpop.permute.xlu0 %570  ;;  %v567_v30 = vpop.permute.xlu1 %566  ;;  %v855_v9 = vld [vmem:[#allocation2 + $0x20] sm:$0xf] }
 0x1ae   : > { %v585_v31 = vsel %vm490_vm11, %v569_v19, %v571_v29  ;;  %v584_v32 = vsel %vm490_vm11, %v567_v30, %v569_v19 }
 0x1af   : > { %2694 = vpow2.f32 %v727_v25  ;;  %v717_v35 = vsub.f32 0.0, %v2969_v27  ;;  %v677_v36 = vadd.f32 %v676_v10, %v585_v31  ;;  %v675_v37 = vadd.f32 %v674_v8, %v584_v32 }
 0x1b0   : > { %v822_v32 = vsel %vm817_vm5, %v2974_v33, %v821_v24 }
 0x1b1   : > { %v725_v38 = vmul.f32 1.442695, %v717_v35  ;;  %v2977_v39 = vadd.f32 %v697_v11, %v677_v36  ;;  %v2979_v40 = vadd.f32 %v697_v11, %v675_v37  ;;  %v2981_v41 = vpop.permute.xlu0 %2630  ;;  %v2983_v43 = vpop.permute.xlu1 %2635  ;;  %v2664_v34 = vpack.i.bf16 %v2974_v33, %v822_v32 }
 0x1b2   : > { %v2986_v3 = vunpack.i.h.bf16 %v2981_v41  ;;  %v2989_v44 = vunpack.i.h.bf16 %v2983_v43 }
 0x1b3   : > { %2696 = vpow2.f32 %v725_v38  ;;  %v716_v45 = vsub.f32 0.0, %v2977_v39  ;;  %v715_v46 = vsub.f32 0.0, %v2979_v40 }
 0x1b4   : > { %v1138_v49 = vmul.f32 %v2986_v3, %v1124_v42  ;;  %v2997_v50 = vmul.f32 0.0, %v2986_v3  ;;  %v1043_v61 = vmul.f32 %v2989_v44, %v1029_v48  ;;  %v3024_v6 = vmul.f32 0.0, %v2989_v44 }
 0x1b5   : > { %v723_v51 = vmul.f32 1.442695, %v716_v45  ;;  %v721_v52 = vmul.f32 1.442695, %v715_v46  ;;  %v2999_v53 = vpop.permute.xlu0 %2640  ;;  %v3001_v54 = vpop.permute.xlu1 %2645  ;;  %v3064_v42 = vunpack.i.l.bf16 %v2981_v41 }
 0x1b6   : > { %1155 = vrot.lane.b32.xlu1 %v1138_v49, %s2793_s12  ;;  %v3005_v56 = vunpack.i.h.bf16 %v2999_v53  ;;  %1149 = vrot.lane.b32.xlu0 %v2997_v50, %s2793_s12  ;;  %v3012_v62 = vunpack.i.l.bf16 %v3001_v54 }
 0x1b7   : > { %2698 = vpow2.f32 %v723_v51  ;;  %v3074_v48 = vsel %vm490_vm11, %v3064_v42, %v2986_v3 }
 0x1b8   : > { %2700 = vpow2.f32 %v721_v52  ;;  %v981_v0 = vmul.f32 0.0, %v3005_v56  ;;  %v984_v1 = vmul.f32 %v3005_v56, %v970_v55  ;;  %v916_v10 = vmul.f32 0.0, %v3012_v62 }
 0x1b9   : > { %v3016_v2 = vpop.permute.xlu0 %2650  ;;  %v919_v11 = vmul.f32 %v3012_v62, %v905_v5 }
 0x1ba   : > { %2660 = vrot.lane.b32.xlu1 %v2659_v57, %s2797_s20  ;;  %1060 = vrot.lane.b32.xlu0 %v1043_v61, %s2788_s8  ;;  %v3021_v4 = vunpack.i.l.bf16 %v3016_v2  ;;  %v3026_v7 = vrot.slane %v981_v0, 4  ;;  %v998_v8 = vrot.slane %v984_v1, 4  ;;  %v3036_v17 = vrot.slane %v916_v10, 4 }
 0x1bb   : > { %v931_v16 = vrot.slane %v919_v11, 4 }
 0x1bc   : > { %v2695_v12 = vpop.eup %2694  ;;  %v999_v15 = vsel %vm817_vm5, %v3026_v7, %v998_v8  ;;  %v869_v14 = vmul.f32 %v3021_v4, %v855_v9  ;;  %v3042_v22 = vmul.f32 0.0, %v3021_v4  ;;  %v3110_v8 = vunpack.i.h.bf16 %v3016_v2  ;;  %v2656_v2 = vpop.permute.xlu1 %2655 }
 0x1bd   : > { %v736_v13 = vadd.f32 1.0, %v2695_v12  ;;  %v932_v23 = vsel %vm817_vm5, %v3036_v17, %v931_v16  ;;  %v3129_v16 = vunpack.i.h.bf16 %v2656_v2 }
 0x1be   : > { %1054 = vrot.lane.b32.xlu1 %v3024_v6, %s2788_s8  ;;  %1010 = vrot.lane.b32.xlu0 %v999_v15, %s2790_s10  ;;  %v3123_v15 = vsel %vm403_vm8, %v3021_v4, %v3110_v8 }
 0x1bf   : > { %2702 = vrcp.f32 %v736_v13 }
 0x1c0   : > { %v2697_v19 = vpop.eup %2696 }
 0x1c1   : > { %v735_v21 = vadd.f32 1.0, %v2697_v19  ;;  %v3131_v19 = vunpack.i.l.bf16 %v2656_v2 }
 0x1c2   : > { %1004 = vrot.lane.b32.xlu1 %v3026_v7, %s2790_s10  ;;  %884 = vrot.lane.b32.xlu0 %v869_v14, %s2789_s9 }
 0x1c3   : > { %2704 = vrcp.f32 %v735_v21 }
 0x1c4   : > { %v2699_v25 = vpop.eup %2698 }
 0x1c5   : > { %v2701_v29 = vpop.eup %2700  ;;  %v734_v30 = vadd.f32 1.0, %v2699_v25 }
 0x1c6   : > { %v733_v31 = vadd.f32 1.0, %v2701_v29  ;;  %878 = vrot.lane.b32.xlu0 %v3042_v22, %s2789_s9  ;;  %943 = vrot.lane.b32.xlu1 %v932_v23, %s2787_s30 }
 0x1c7   : > { %2706 = vrcp.f32 %v734_v30  ;;  %v3140_v30 = vunpack.i.l.bf16 %v2999_v53 }
 0x1c8   : > { %2708 = vrcp.f32 %v733_v31  ;;  %v3145_v31 = vsel %vm368_vm12, %v3131_v19, %v3129_v16 }
 0x1ca   : > { %937 = vrot.lane.b32.xlu1 %v3036_v17, %s2787_s30 }
 0x1cc   : > { %v2703_v35 = vpop.eup %2702 }
 0x1cd   : > { %v3055_v36 = vmul.f32 %v2703_v35, %v2965_v18 }
 0x1ce   : > { %2665 = vrot.lane.b32.xlu1 %v2664_v34, %s2801_s14 }
 0x1cf   : > { %754 = vst [vmem:[#allocation2 + $0x30] sm:$0xf] %v3055_v36  ;;  %964 = vst [vmem:[#allocation3 + $0xb8] sm:$0xf] %v3055_v36 }
 0x1d0   : > { %v2705_v37 = vpop.eup %2704 }
 0x1d1   : > { %v3061_v38 = vmul.f32 %v2705_v37, %v2969_v27 }
 0x1d3   : > { %753 = vst [vmem:[#allocation2 + $0x28] sm:$0xf] %v3061_v38  ;;  %963 = vst [vmem:[#allocation3 + $0x78] sm:$0xf] %v3061_v38 }
 0x1d4   : > { %v2707_v18 = vpop.eup %2706 }
 0x1d5   : > { %v2709_v45 = vpop.eup %2708  ;;  %v3069_v46 = vmul.f32 %v2707_v18, %v2977_v39  ;;  %v3085_v39 = vunpack.i.l.bf16 %v2983_v43  ;;  %v3150_v18 = vunpack.i.h.bf16 %v3001_v54 }
 0x1d6   : > { %v1123_v47 = vld [vmem:[#allocation2 + $0x30] sm:$0xf]  ;;  %v3077_v27 = vmul.f32 %v2709_v45, %v2979_v40 }
 0x1d7   : > { %v1137_v41 = vmul.f32 %v3074_v48, %v1123_v47  ;;  %v1134_v49 = vmul.f32 %v3074_v48, %v3069_v46  ;;  %v1028_v57 = vld [vmem:[#allocation2 + $0x30] sm:$0xf]  ;;  %v3095_v61 = vsel %vm458_vm9, %v3085_v39, %v2989_v44  ;;  %v3104_v5 = vrot.slane %v3069_v46, 4 }
 0x1d8   : > { %v1133_v55 = vmul.f32 %v3064_v42, %v3077_v27  ;;  %v1042_v0 = vmul.f32 %v3095_v61, %v1028_v57  ;;  %v1039_v1 = vmul.f32 %v3095_v61, %v3069_v46  ;;  %v1038_v9 = vmul.f32 %v3085_v39, %v3077_v27  ;;  %v857_v12 = vld [vmem:[#allocation2 + $0x30] sm:$0xf] }
 0x1d9   : > { %1153 = vrot.lane.b32.xlu0 %v1137_v41, %s2793_s12  ;;  %1147 = vrot.lane.b32.xlu1 %v1134_v49, %s2793_s12  ;;  %v3115_v10 = vrot.slane %v3077_v27, 4  ;;  %v871_v14 = vmul.f32 %v3110_v8, %v857_v12  ;;  %v867_v20 = vmul.f32 %v3123_v15, %v3077_v27  ;;  %v868_v21 = vmul.f32 %v3110_v8, %v3069_v46  ;;  %v760_v24 = vld [vmem:[#allocation2 + $0x30] sm:$0xf] }
 0x1da   : > { %v1122_v51 = vld [vmem:[#allocation2 + $0x28] sm:$0xf]  ;;  %v1078_v25 = vld [vmem:[#allocation2 + $0x30] sm:$0xf]  ;;  %v774_v34 = vmul.f32 %v3129_v16, %v760_v24  ;;  %v3157_v47 = vsel %vm442_vm7, %v3140_v30, %v3005_v56  ;;  %v918_v41 = vmul.f32 %v3150_v18, %v3069_v46 }
 0x1db   : > { %v1136_v52 = vmul.f32 %v3064_v42, %v1122_v51  ;;  %v1027_v40 = vld [vmem:[#allocation2 + $0x28] sm:$0xf]  ;;  %v1091_v35 = vrot.slane %v1078_v25, 4  ;;  %v969_v45 = vld [vmem:[#allocation2 + $0x30] sm:$0xf]  ;;  %v980_v49 = vmul.f32 %v3157_v47, %v3069_v46 }
 0x1dc   : > { %v1041_v43 = vmul.f32 %v3085_v39, %v1027_v40  ;;  %v856_v11 = vld [vmem:[#allocation2 + $0x28] sm:$0xf]  ;;  %v983_v40 = vmul.f32 %v3157_v47, %v969_v45 }
 0x1dd   : > { %1151 = vrot.lane.b32.xlu0 %v1136_v52, %s2793_s12  ;;  %1145 = vrot.lane.b32.xlu1 %v1133_v55, %s2793_s12  ;;  %v870_v13 = vmul.f32 %v3123_v15, %v856_v11  ;;  %v759_v23 = vld [vmem:[#allocation2 + $0x28] sm:$0xf]  ;;  %v1092_v54 = vsel %vm817_vm5, %v3104_v5, %v1091_v35  ;;  %v810_v55 = vld [vmem:[#allocation2 + $0x30] sm:$0xf] }
 0x1de   : > { %v809_v29 = vld [vmem:[#allocation2 + $0x28] sm:$0xf]  ;;  %v773_v32 = vmul.f32 %v3145_v31, %v759_v23  ;;  %v996_v11 = vrot.slane %v983_v40, 4  ;;  %v907_v35 = vld [vmem:[#allocation2 + $0x30] sm:$0xf] }
 0x1df   : > { %v823_v37 = vrot.slane %v809_v29, 4  ;;  %v1077_v53 = vld [vmem:[#allocation2 + $0x28] sm:$0xf]  ;;  %v921_v45 = vmul.f32 %v3150_v18, %v907_v35  ;;  %v1518_v40 = vld [vmem:[#allocation2 + $0x38] sm:$0xf] }
 0x1e0   : > { %v1089_v51 = vrot.slane %v1077_v53, 4  ;;  %v968_v57 = vld [vmem:[#allocation2 + $0x28] sm:$0xf] }
 0x1e1   : > { %1056 = vrot.lane.b32.xlu0 %v1041_v43, %s2788_s8  ;;  %1058 = vrot.lane.b32.xlu1 %v1042_v0, %s2788_s8  ;;  %v824_v52 = vsel %vm817_vm5, %v3115_v10, %v823_v37  ;;  %v825_v43 = vrot.slane %v810_v55, 4  ;;  %v930_v0 = vrot.slane %v918_v41, 4  ;;  %v982_v12 = vmul.f32 %v3140_v30, %v968_v57  ;;  %v906_v2 = vld [vmem:[#allocation2 + $0x28] sm:$0xf] }
 0x1e2   : > { %v935_v41 = vrot.slane %v921_v45, 4  ;;  %v771_v57 = vmul.f32 %v3129_v16, %v3069_v46 }
 0x1e3   : > { %v994_v23 = vrot.slane %v982_v12, 4  ;;  %v1656_v12 = vld [vmem:[#allocation2 + $0x38] sm:$0xf] }
 0x1e5   : > { %1052 = vrot.lane.b32.xlu0 %v1039_v1, %s2788_s8  ;;  %1097 = vrot.lane.b32.xlu1 %v3104_v5, %s2797_s20  ;;  %v1090_v1 = vsel %vm817_vm5, %v3115_v10, %v1089_v51  ;;  %v769_v51 = vmul.f32 0.0, %v3131_v19 }
 0x1e9   : > { %1050 = vrot.lane.b32.xlu0 %v1038_v9, %s2788_s8  ;;  %1095 = vrot.lane.b32.xlu1 %v3115_v10, %s2797_s20  ;;  %v992_v9 = vrot.slane %v980_v49, 4  ;;  %v770_v49 = vmul.f32 %v3145_v31, %v3077_v27 }
 0x1ed   : > { %886 = vrot.lane.b32.xlu0 %v870_v13, %s2789_s9  ;;  %888 = vrot.lane.b32.xlu1 %v871_v14, %s2789_s9  ;;  %v979_v13 = vmul.f32 %v3140_v30, %v3077_v27  ;;  %v3180_v14 = vsel %vm379_vm10, %v3012_v62, %v3150_v18 }
 0x1ee   : > { %v920_v24 = vmul.f32 %v3180_v14, %v906_v2  ;;  %v917_v29 = vmul.f32 %v3180_v14, %v3077_v27 }
 0x1ef   : > { %v991_v25 = vrot.slane %v979_v13, 4 }
 0x1f0   : > { %v929_v37 = vrot.slane %v917_v29, 4 }
 0x1f1   : > { %880 = vrot.lane.b32.xlu0 %v867_v20, %s2789_s9  ;;  %882 = vrot.lane.b32.xlu1 %v868_v21, %s2789_s9  ;;  %v826_v20 = vsel %vm817_vm5, %v3104_v5, %v825_v43  ;;  %v997_v21 = vsel %vm817_vm5, %v992_v9, %v996_v11  ;;  %v1611_v43 = vld [vmem:[#allocation2 + $0x38] sm:$0xf] }
 0x1f5   : > { %789 = vrot.lane.b32.xlu0 %v773_v32, %s2792_s11  ;;  %791 = vrot.lane.b32.xlu1 %v774_v34, %s2792_s11  ;;  %v995_v32 = vsel %vm817_vm5, %v991_v25, %v994_v23  ;;  %v933_v34 = vrot.slane %v920_v24, 4  ;;  %v1419_v23 = vld [vmem:[#allocation2 + $0x20] sm:$0xf] }
 0x1f7   : > { %v934_v53 = vsel %vm817_vm5, %v929_v37, %v933_v34 }
 0x1f9   : > { %1103 = vrot.lane.b32.xlu0 %v1092_v54, %s2797_s20  ;;  %835 = vrot.lane.b32.xlu1 %v824_v52, %s2801_s14  ;;  %v936_v54 = vsel %vm817_vm5, %v930_v0, %v935_v41  ;;  %v758_v52 = vld [vmem:[#allocation2 + $0x20] sm:$0xf] }
 0x1fa   : > { %v772_v55 = vmul.f32 %v3131_v19, %v758_v52 }
 0x1fd   : > { %1101 = vrot.lane.b32.xlu0 %v1090_v1, %s2797_s20  ;;  %941 = vrot.lane.b32.xlu1 %v930_v0, %s2787_s30  ;;  %v1569_v0 = vld [vmem:[#allocation2 + $0x38] sm:$0xf]  ;;  %v1524_v1 = vmul.f32 %v3005_v56, %v1518_v40 }
 0x1fe   : > { %v1575_v11 = vmul.f32 %v2989_v44, %v1569_v0 }
 0x1ff   : > { %v1538_v2 = vrot.slane %v1524_v1, 4 }
 0x201   : > { %837 = vrot.lane.b32.xlu0 %v826_v20, %s2801_s14  ;;  %1008 = vrot.lane.b32.xlu1 %v997_v21, %s2790_s10  ;;  %v1662_v20 = vmul.f32 %v2986_v3, %v1656_v12  ;;  %v1539_v21 = vsel %vm817_vm5, %v3026_v7, %v1538_v2 }
 0x205   : > { %1002 = vrot.lane.b32.xlu0 %v992_v9, %s2790_s10  ;;  %1006 = vrot.lane.b32.xlu1 %v995_v32, %s2790_s10  ;;  %v1625_v9 = vrot.slane %v1611_v43, 4  ;;  %v1461_v32 = vld [vmem:[#allocation2 + $0x20] sm:$0xf] }
 0x206   : > { %v1467_v34 = vmul.f32 %v3012_v62, %v1461_v32 }
 0x207   : > { %v1626_v13 = vsel %vm817_vm5, %v2974_v33, %v1625_v9 }
 0x208   : > { %v2670_v24 = vpack.i.bf16 %v2974_v33, %v1626_v13 }
 0x209   : > { %1000 = vrot.lane.b32.xlu0 %v991_v25, %s2790_s10  ;;  %945 = vrot.lane.b32.xlu1 %v934_v53, %s2787_s30  ;;  %v1425_v25 = vmul.f32 %v3021_v4, %v1419_v23 }
 0x20d   : > { %939 = vrot.lane.b32.xlu0 %v929_v37, %s2787_s30  ;;  %831 = vrot.lane.b32.xlu1 %v3104_v5, %s2801_s14  ;;  %v1199_v5 = vld [vmem:[%s3814_s4] sm:$0xff]  ;;  %v1479_v37 = vrot.slane %v1467_v34, 4 }
 0x20f   : > { %v1480_v45 = vsel %vm817_vm5, %v3036_v17, %v1479_v37 }
 0x211   : > { %947 = vrot.lane.b32.xlu0 %v936_v54, %s2787_s30  ;;  %783 = vrot.lane.b32.xlu1 %v770_v49, %s2792_s11 }
 0x215   : > { %829 = vrot.lane.b32.xlu0 %v3115_v10, %s2801_s14  ;;  %781 = vrot.lane.b32.xlu1 %v769_v51, %s2792_s11  ;;  %v1200_v10 = vld [vmem:[%s3814_s4 + $0x8] sm:$0xf] }
 0x219   : > { %787 = vrot.lane.b32.xlu0 %v772_v55, %s2792_s11  ;;  %1203 = vperm.xlu1 %2628, %v1199_v5  }
 0x21d   : > { %785 = vrot.lane.b32.xlu0 %v771_v57, %s2792_s11  ;;  %1673 = vrot.lane.b32.xlu1 %v2997_v50, %s2793_s12 }
 0x221   : > { %1208 = vperm.xlu0 %2669, %v1200_v10   ;;  %1592 = vrot.lane.b32.xlu1 %v1575_v11, %s2788_s8 }
 0x225   : > { %1679 = vrot.lane.b32.xlu0 %v1662_v20, %s2793_s12  ;;  %1550 = vrot.lane.b32.xlu1 %v1539_v21, %s2790_s10 }
 0x228   : > { %v1156_v29 = vpop.permute.xlu1 %1155  ;;  %v1150_v33 = vpop.permute.xlu0 %1149 }
 0x229   : > { %2671 = vrot.lane.b32.xlu0 %v2670_v24, %s2797_s20  ;;  %1440 = vrot.lane.b32.xlu1 %v1425_v25, %s2789_s9 }
 0x22c   : > { %v3237_v35 = vpop.permute.xlu1 %2660  ;;  %v1061_v49 = vpop.permute.xlu0 %1060 }
 0x22d   : > { %1586 = vrot.lane.b32.xlu0 %v3024_v6, %s2788_s8  ;;  %1434 = vrot.lane.b32.xlu1 %v3042_v22, %s2789_s9  ;;  %v2663_v21 = vunpack.i.h.bf16 %v3237_v35 }
 0x230   : > { %v3243_v53 = vpop.permute.xlu1 %1054  ;;  %v3256_v51 = vpop.permute.xlu0 %1010 }
 0x231   : > { %1544 = vrot.lane.b32.xlu0 %v3026_v7, %s2790_s10 }
 0x234   : > { %v3249_v41 = vpop.permute.xlu1 %1004  ;;  %v885_v5 = vpop.permute.xlu0 %884 }
 0x235   : > { %1491 = vrot.lane.b32.xlu0 %v1480_v45, %s2787_s30 }
 0x238   : > { %v3254_v54 = vpop.permute.xlu1 %943  ;;  %v3262_v40 = vpop.permute.xlu0 %878 }
 0x239   : > { %1485 = vrot.lane.b32.xlu0 %v3036_v17, %s2787_s30 }
 0x23c   : > { %v3258_v52 = vpop.permute.xlu1 %937 }
 0x240   : > { %v3260_v55 = vpop.permute.xlu1 %2665 }
 0x24b   : > { %v1154_v57 = vpop.permute.xlu0 %1153  ;;  %v1148_v43 = vpop.permute.xlu1 %1147 }
 0x24c   : > { %v1160_v0 = vsel %vm368_vm12, %v1154_v57, %v1156_v29  ;;  %v1158_v32 = vsel %vm368_vm12, %v1148_v43, %v1150_v33 }
 0x24d   : > { %1168 = vst [vmem:[#allocation3 + $0x70] sm:$0xf] %v1160_v0 }
 0x24f   : > { %v1152_v1 = vpop.permute.xlu0 %1151  ;;  %v1146_v10 = vpop.permute.xlu1 %1145 }
 0x250   : > { %v1159_v9 = vsel %vm368_vm12, %v1152_v1, %v1154_v57  ;;  %v1157_v34 = vsel %vm368_vm12, %v1146_v10, %v1148_v43 }
 0x251   : > { %1167 = vst [vmem:[#allocation3 + $0xc8] sm:$0xf] %v1159_v9 }
 0x253   : > { %v1057_v11 = vpop.permute.xlu0 %1056  ;;  %v1059_v12 = vpop.permute.xlu1 %1058 }
 0x254   : > { %v1198_v2 = vld [vmem:[#allocation3 + $0x70] sm:$0xf]  ;;  %v1064_v13 = vsel %vm403_vm8, %v1057_v11, %v1059_v12  ;;  %v1065_v20 = vsel %vm403_vm8, %v1059_v12, %v1061_v49 }
 0x255   : > { %2574 = vmatprep.subr.msk.mxu1 %vm817_vm5, %v1198_v2  ;;  %1072 = vst [vmem:[#allocation3 + $0xd0] sm:$0xf] %v1064_v13  ;;  %1073 = vst [vmem:[#allocation3 + $0xa8] sm:$0xf] %v1065_v20  ;;  %v2662_v2 = vunpack.i.l.bf16 %v3237_v35 }
 0x257   : > { %v1053_v23 = vpop.permute.xlu0 %1052  ;;  %v1098_v24 = vpop.permute.xlu1 %1097 }
 0x258   : > { %v1197_v25 = vld [vmem:[#allocation3 + $0xc8] sm:$0xf]  ;;  %v1108_v29 = vsel %vm434_vm15, %v1098_v24, %v2663_v21 }
 0x259   : > { %2575 = vmatpush1.msk.msra.mxu1 %vm817_vm5, %v1197_v25  ;;  %1116 = vst [vmem:[#allocation3 + $0xa8] sm:$0xf0] %v1108_v29 }
 0x25a   : > { %1230 = vmatprep.subr.mxu1 %v1158_v32 }
 0x25b   : > { %v1051_v37 = vpop.permute.xlu0 %1050  ;;  %1231 = vmatpush1.msra.mxu1 %v1157_v34  ;;  %v1096_v45 = vpop.permute.xlu1 %1095  ;;  %v1063_v34 = vsel %vm403_vm8, %v1053_v23, %v3243_v53 }
 0x25c   : > { %v1107_v49 = vsel %vm434_vm15, %v1096_v45, %v1098_v24  ;;  %v1062_v35 = vsel %vm403_vm8, %v1051_v37, %v1053_v23 }
 0x25d   : > { %1115 = vst [vmem:[#allocation3 + $0xd0] sm:$0xf0] %v1107_v49 }
 0x25f   : > { %v887_v57 = vpop.permute.xlu0 %886  ;;  %v889_v0 = vpop.permute.xlu1 %888 }
 0x260   : > { %v892_v1 = vsel %vm458_vm9, %v885_v5, %v887_v57  ;;  %v893_v9 = vsel %vm458_vm9, %v887_v57, %v889_v0  ;;  %v1192_v29 = vld [vmem:[#allocation3 + $0xa8] sm:$0xff] }
 0x261   : > { %900 = vst [vmem:[#allocation3 + $0x80] sm:$0xf] %v892_v1  ;;  %901 = vst [vmem:[#allocation3 + $0x88] sm:$0xf] %v893_v9 }
 0x263   : > { %v3277_v33 = vpop.permute.xlu0 %880  ;;  %v3279_v11 = vpop.permute.xlu1 %882 }
 0x264   : > { %v1191_v32 = vld [vmem:[#allocation3 + $0xd0] sm:$0xff] }
 0x267   : > { %v3281_v43 = vpop.permute.xlu0 %789  ;;  %v792_v10 = vpop.permute.xlu1 %791 }
 0x268   : > { %v796_v12 = vsel %vm490_vm11, %v3281_v43, %v792_v10 }
 0x269   : > { %804 = vst [vmem:[#allocation3 + $0x18] sm:$0xf] %v796_v12 }
 0x26b   : > { %v1104_v13 = vpop.permute.xlu0 %1103  ;;  %v3286_v20 = vpop.permute.xlu1 %835 }
 0x26c   : > { %v1110_v5 = vsel %vm434_vm15, %v1104_v13, %v2662_v2 }
 0x26d   : > { %1232 = vmatprep.subr.mxu1 %v1110_v5 }
 0x26f   : > { %v1102_v21 = vpop.permute.xlu0 %1101  ;;  %v942_v24 = vpop.permute.xlu1 %941 }
 0x270   : > { %v1109_v25 = vsel %vm434_vm15, %v1102_v21, %v1104_v13  ;;  %v2668_v21 = vunpack.i.h.bf16 %v3260_v55 }
 0x271   : > { %1233 = vmatpush1.msra.mxu1 %v1109_v25 }
 0x272   : > { %1234 = vmatprep.subr.mxu1 %v1192_v29 }
 0x273   : > { %v838_v45 = vpop.permute.xlu0 %837  ;;  %v1009_v49 = vpop.permute.xlu1 %1008  ;;  %1235 = vmatpush1.msra.mxu1 %v1191_v32 }
 0x274   : > { %v1015_v57 = vsel %vm379_vm10, %v1009_v49, %v3256_v51  ;;  %1236 = vmatprep.subr.mxu1 %v1063_v34 }
 0x275   : > { %1237 = vmatpush1.msra.mxu1 %v1062_v35  ;;  %v891_v35 = vsel %vm458_vm9, %v3277_v33, %v3279_v11 }
 0x276   : > { %1238 = vmatprep.subr.mxu1 %v1015_v57 }
 0x277   : > { %v1003_v0 = vpop.permute.xlu0 %1002  ;;  %v1007_v1 = vpop.permute.xlu1 %1006 }
 0x278   : > { %v1013_v9 = vsel %vm379_vm10, %v1003_v0, %v3249_v41  ;;  %v1014_v10 = vsel %vm379_vm10, %v1007_v1, %v1009_v49  ;;  %v843_v1 = vsel %vm839_vm13, %v3286_v20, %v838_v45 }
 0x279   : > { %1021 = vst [vmem:[#allocation3 + $0xb8] sm:$0xf0] %v1013_v9  ;;  %1239 = vmatpush1.msra.mxu1 %v1014_v10 }
 0x27b   : > { %v1001_v53 = vpop.permute.xlu0 %1000  ;;  %v946_v13 = vpop.permute.xlu1 %945 }
 0x27c   : > { %v1012_v12 = vsel %vm379_vm10, %v1001_v53, %v1003_v0 }
 0x27d   : > { %1020 = vst [vmem:[#allocation3 + $0x78] sm:$0xf0] %v1012_v12  ;;  %v1170_v12 = vld [vmem:[%s3813_s3 + $0x8] sm:$0xf] }
 0x27f   : > { %v940_v23 = vpop.permute.xlu0 %939  ;;  %v832_v29 = vpop.permute.xlu1 %831 }
 0x280   : > { %v949_v51 = vsel %vm442_vm7, %v3258_v52, %v940_v23  ;;  %v950_v37 = vsel %vm442_vm7, %v940_v23, %v942_v24  ;;  %v1186_v2 = vld [vmem:[#allocation3 + $0xb8] sm:$0xff]  ;;  %v951_v52 = vsel %vm442_vm7, %v3254_v54, %v946_v13  ;;  %v890_v54 = vsel %vm458_vm9, %v3262_v40, %v3277_v33 }
 0x281   : > { %957 = vst [vmem:[#allocation3 + $0x80] sm:$0xf0] %v949_v51  ;;  %958 = vst [vmem:[#allocation3 + $0x88] sm:$0xf0] %v950_v37  ;;  %1240 = vmatprep.subr.mxu1 %v1186_v2 }
 0x283   : > { %v948_v41 = vpop.permute.xlu0 %947  ;;  %v784_v9 = vpop.permute.xlu1 %783 }
 0x284   : > { %v1185_v5 = vld [vmem:[#allocation3 + $0x78] sm:$0xff]  ;;  %v952_v25 = vsel %vm442_vm7, %v946_v13, %v948_v41 }
 0x285   : > { %1241 = vmatpush1.msra.mxu1 %v1185_v5 }
 0x286   : > { %1242 = vmatprep.subr.mxu1 %v3069_v46 }
 0x287   : > { %v830_v32 = vpop.permute.xlu0 %829  ;;  %1243 = vmatpush1.msra.mxu1 %v3077_v27  ;;  %v2667_v27 = vunpack.i.l.bf16 %v3260_v55  ;;  %v782_v53 = vpop.permute.xlu1 %781 }
 0x288   : > { %v840_v24 = vsel %vm839_vm13, %v2668_v21, %v830_v32  ;;  %v841_v34 = vsel %vm839_vm13, %v830_v32, %v832_v29  ;;  %1244 = vmatprep.subr.mxu1 %v952_v25  ;;  %v1180_v49 = vld [vmem:[#allocation3 + $0x88] sm:$0xff]  ;;  %v1179_v46 = vld [vmem:[#allocation3 + $0x80] sm:$0xff]  ;;  %v793_v45 = vsel %vm490_vm11, %v782_v53, %v784_v9 }
 0x289   : > { %848 = vst [vmem:[#allocation3 + $0xd8] sm:$0xf0] %v840_v24  ;;  %849 = vst [vmem:[#allocation3 + $0x18] sm:$0xf0] %v841_v34  ;;  %1245 = vmatpush1.msra.mxu1 %v951_v52  ;;  %v842_v11 = vsel %vm839_vm13, %v2667_v27, %v3286_v20  ;;  %v3329_v20 = vld [vmem:[#allocation2] sm:$0xff] }
 0x28a   : > { %1246 = vmatprep.subr.mxu1 %v1180_v49 }
 0x28b   : > { %v788_v57 = vpop.permute.xlu0 %787  ;;  %1247 = vmatpush1.msra.mxu1 %v1179_v46 }
 0x28c   : > { %v795_v0 = vsel %vm490_vm11, %v788_v57, %v3281_v43  ;;  %1248 = vmatprep.subr.mxu1 %v891_v35  ;;  %v1169_v43 = vld [vmem:[%s3813_s3] sm:$0xff] }
 0x28d   : > { %803 = vst [vmem:[#allocation3 + $0xd8] sm:$0xf] %v795_v0  ;;  %1249 = vmatpush1.msra.mxu1 %v890_v54 }
 0x28e   : > { %1250 = vmatprep.subr.mxu1 %v843_v1 }
 0x28f   : > { %1251 = vmatpush1.msra.mxu1 %v842_v11  ;;  %v786_v10 = vpop.permute.xlu0 %785 }
 0x290   : > { %v1174_v55 = vld [vmem:[#allocation3 + $0x18] sm:$0xff]  ;;  %v794_v33 = vsel %vm490_vm11, %v784_v9, %v786_v10 }
 0x291   : > { %1252 = vmatprep.subr.mxu1 %v1174_v55 }
 0x294   : > { %v1173_v40 = vld [vmem:[#allocation3 + $0xd8] sm:$0xff]  ;;  %v1204_v23 = vpop.permute.xlu1 %1203 }
 0x295   : > { %1253 = vmatpush1.msra.mxu1 %v1173_v40 }
 0x296   : > { %1254 = vmatprep.subr.mxu1 %v794_v33 }
 0x297   : > { %1255 = vmatpush1.msra.mxu1 %v793_v45 }
 0x298   : > { %2576 = vmatmul.mubr.msk.f32.vlgmr.msra.gmra.mxu1 %vm1211_vm14, %v1169_v43 }
 0x299   : > { %1294 = vmatprep.mubr.f32.mxu1 %v3329_v20 }
 0x29c   : > { %2577 = vmatmul.mubr.msk.f32.gmra.mxu1 %vm1211_vm14, %v1170_v12  ;;  %v1209_v5 = vpop.permute.xlu0 %1208 }
 0x29d   : > { %2338 = vmatprep.mubr.f32.mxu1 %v3329_v20 }
 0x358   : > { %v1290_v51 = vpop.f32.mrf.mxu1 }
 0x359   : > { %v1291_v37 = vadd.f32 %v1290_v51, %v1204_v23 }
 0x35a   : > { %v1292_v2 = vpop.f32.mrf.mxu1 }
 0x35b   : > { %v1301_v13 = vsub.f32 0.0, %v1291_v37  ;;  %v1293_v41 = vadd.f32 %v1292_v2, %v1204_v23 }
 0x35c   : > { %v1296_v21 = vpop.f32.mrf.mxu1 }
 0x35d   : > { %v1305_v25 = vmul.f32 1.442695, %v1301_v13  ;;  %v1302_v29 = vsub.f32 0.0, %v1293_v41  ;;  %v1297_v32 = vadd.f32 %v1296_v21, %v1209_v5 }
 0x35e   : > { %v1298_v52 = vpop.f32.mrf.mxu1 }
 0x35f   : > { %2710 = vpow2.f32 %v1305_v25  ;;  %v1307_v24 = vmul.f32 1.442695, %v1302_v29  ;;  %v1303_v34 = vsub.f32 0.0, %v1297_v32  ;;  %v1299_v49 = vadd.f32 %v1298_v52, %v1209_v5 }
 0x361   : > { %2712 = vpow2.f32 %v1307_v24  ;;  %v1309_v46 = vmul.f32 1.442695, %v1303_v34  ;;  %v1304_v35 = vsub.f32 0.0, %v1299_v49 }
 0x363   : > { %2714 = vpow2.f32 %v1309_v46  ;;  %v1311_v57 = vmul.f32 1.442695, %v1304_v35 }
 0x365   : > { %2716 = vpow2.f32 %v1311_v57 }
 0x36c   : > { %v2711_v27 = vpop.eup %2710 }
 0x36d   : > { %v1313_v54 = vadd.f32 1.0, %v2711_v27 }
 0x36e   : > { %v2713_v0 = vpop.eup %2712 }
 0x36f   : > { %2718 = vrcp.f32 %v1313_v54  ;;  %v1314_v1 = vadd.f32 1.0, %v2713_v0 }
 0x370   : > { %v2715_v9 = vpop.eup %2714 }
 0x371   : > { %v1315_v11 = vadd.f32 1.0, %v2715_v9  ;;  %2720 = vrcp.f32 %v1314_v1 }
 0x372   : > { %v2717_v55 = vpop.eup %2716 }
 0x373   : > { %2722 = vrcp.f32 %v1315_v11  ;;  %v1316_v10 = vadd.f32 1.0, %v2717_v55 }
 0x375   : > { %2724 = vrcp.f32 %v1316_v10 }
 0x37c   : > { %v2719_v53 = vpop.eup %2718 }
 0x37d   : > { %v3337_v40 = vmul.f32 %v2719_v53, %v1291_v37 }
 0x37e   : > { %v2721_v33 = vpop.eup %2720 }
 0x37f   : > { %v1657_v43 = vmul.f32 %v3064_v42, %v3337_v40  ;;  %v1570_v45 = vmul.f32 %v3085_v39, %v3337_v40  ;;  %v3345_v2 = vmul.f32 %v2721_v33, %v1293_v41  ;;  %v3348_v13 = vrot.slane %v3337_v40, 4 }
 0x380   : > { %v2723_v12 = vpop.eup %2722  ;;  %v1423_v5 = vmul.f32 %v3337_v40, %v3123_v15  ;;  %v1519_v25 = vmul.f32 %v3140_v30, %v3337_v40  ;;  %v1465_v52 = vmul.f32 %v3337_v40, %v3180_v14 }
 0x381   : > { %v1323_v23 = vmul.f32 %v2723_v12, %v1297_v32  ;;  %1669 = vrot.lane.b32.xlu0 %v1657_v43, %s2793_s12  ;;  %1582 = vrot.lane.b32.xlu1 %v1570_v45, %s2788_s8  ;;  %v1658_v41 = vmul.f32 %v3345_v2, %v3074_v48  ;;  %v1571_v21 = vmul.f32 %v3345_v2, %v3095_v61  ;;  %v3364_v29 = vrot.slane %v3345_v2, 4 }
 0x382   : > { %v2725_v51 = vpop.eup %2724  ;;  %v1531_v32 = vrot.slane %v1519_v25, 4  ;;  %v1424_v24 = vmul.f32 %v3110_v8, %v3345_v2  ;;  %v1477_v34 = vrot.slane %v1465_v52, 4  ;;  %v1520_v9 = vmul.f32 %v3345_v2, %v3157_v47 }
 0x383   : > { %1511 = vst [vmem:[#allocation3 + $0x78] sm:$0xf] %v1323_v23  ;;  %1327 = vst [vmem:[#allocation2 + $0x28] sm:$0xf] %v1323_v23  ;;  %v1324_v37 = vmul.f32 %v2725_v51, %v1299_v49  ;;  %v3375_v49 = vmul.f32 %v3150_v18, %v3345_v2 }
 0x384   : > { %v1532_v53 = vrot.slane %v1520_v9, 4  ;;  %v3408_v9 = vrot.slane %v3329_v20, 4 }
 0x385   : > { %1512 = vst [vmem:[#allocation3 + $0xb8] sm:$0xf] %v1324_v37  ;;  %1328 = vst [vmem:[#allocation2 + $0x30] sm:$0xf] %v1324_v37  ;;  %1627 = vrot.lane.b32.xlu0 %v3348_v13, %s2797_s20  ;;  %1436 = vrot.lane.b32.xlu1 %v1423_v5, %s2789_s9  ;;  %v1478_v57 = vrot.slane %v3375_v49, 4 }
 0x389   : > { %1671 = vrot.lane.b32.xlu0 %v1658_v41, %s2793_s12  ;;  %1584 = vrot.lane.b32.xlu1 %v1571_v21, %s2788_s8 }
 0x38a   : > { %v1654_v46 = vld [vmem:[#allocation2 + $0x28] sm:$0xf] }
 0x38b   : > { %v1375_v35 = vld [vmem:[#allocation2 + $0x28] sm:$0xf]  ;;  %v1660_v27 = vmul.f32 %v3064_v42, %v1654_v46 }
 0x38c   : > { %v1567_v54 = vld [vmem:[#allocation2 + $0x28] sm:$0xf]  ;;  %v1388_v0 = vrot.slane %v1375_v35, 4  ;;  %v1568_v55 = vld [vmem:[#allocation2 + $0x30] sm:$0xf] }
 0x38d   : > { %1629 = vrot.lane.b32.xlu0 %v3364_v29, %s2797_s20  ;;  %1540 = vrot.lane.b32.xlu1 %v1531_v32, %s2790_s10  ;;  %v1573_v1 = vmul.f32 %v3085_v39, %v1567_v54  ;;  %v1516_v10 = vld [vmem:[#allocation2 + $0x28] sm:$0xf]  ;;  %v1574_v33 = vmul.f32 %v1568_v55, %v3095_v61  ;;  %v1421_v45 = vld [vmem:[#allocation2 + $0x30] sm:$0xf] }
 0x38e   : > { %v1389_v11 = vsel %vm817_vm5, %v3348_v13, %v1388_v0  ;;  %v1420_v43 = vld [vmem:[#allocation2 + $0x28] sm:$0xf]  ;;  %v1522_v12 = vmul.f32 %v3140_v30, %v1516_v10  ;;  %v1427_v5 = vmul.f32 %v3110_v8, %v1421_v45  ;;  %v1517_v52 = vld [vmem:[#allocation2 + $0x30] sm:$0xf] }
 0x38f   : > { %v1609_v23 = vld [vmem:[#allocation2 + $0x28] sm:$0xf]  ;;  %v1426_v37 = vmul.f32 %v1420_v43, %v3123_v15  ;;  %v1523_v0 = vmul.f32 %v1517_v52, %v3157_v47 }
 0x390   : > { %v1462_v51 = vld [vmem:[#allocation2 + $0x28] sm:$0xf]  ;;  %v1621_v41 = vrot.slane %v1609_v23, 4  ;;  %v1534_v21 = vrot.slane %v1522_v12, 4 }
 0x391   : > { %1438 = vrot.lane.b32.xlu0 %v1424_v24, %s2789_s9  ;;  %1487 = vrot.lane.b32.xlu1 %v1477_v34, %s2787_s30  ;;  %v1468_v25 = vmul.f32 %v1462_v51, %v3180_v14  ;;  %v1374_v24 = vld [vmem:[#allocation2 + $0x20] sm:$0xf]  ;;  %v1536_v43 = vrot.slane %v1523_v0, 4 }
 0x392   : > { %v1622_v46 = vsel %vm817_vm5, %v3348_v13, %v1621_v41  ;;  %v1535_v35 = vsel %vm817_vm5, %v1531_v32, %v1534_v21  ;;  %v1376_v32 = vld [vmem:[#allocation2 + $0x30] sm:$0xf]  ;;  %v1333_v21 = vld [vmem:[#allocation2 + $0x28] sm:$0xf] }
 0x393   : > { %v1481_v54 = vrot.slane %v1468_v25, 4  ;;  %v1537_v23 = vsel %vm817_vm5, %v1532_v53, %v1536_v43  ;;  %v1390_v51 = vrot.slane %v1376_v32, 4  ;;  %v1334_v41 = vld [vmem:[#allocation2 + $0x30] sm:$0xf]  ;;  %v1339_v52 = vmul.f32 %v1333_v21, %v3145_v31  ;;  %v2043_v32 = vld [vmem:[#allocation2 + $0x38] sm:$0xf] }
 0x395   : > { %1489 = vrot.lane.b32.xlu0 %v1478_v57, %s2787_s30  ;;  %1675 = vrot.lane.b32.xlu1 %v1660_v27, %s2793_s12  ;;  %v1655_v27 = vld [vmem:[#allocation2 + $0x30] sm:$0xf]  ;;  %v1482_v10 = vsel %vm817_vm5, %v1477_v34, %v1481_v54 }
 0x396   : > { %v1661_v55 = vmul.f32 %v1655_v27, %v3074_v48  ;;  %v1332_v27 = vld [vmem:[#allocation2 + $0x20] sm:$0xf]  ;;  %v3442_v54 = vld [vmem:[%s3811_s1 + $0x10] sm:$0xff] }
 0x397   : > { %2573 = vmatmul.mubr.msk.f32.gmra.mxu0 %vm596_vm6, %v3442_v54  ;;  %v1338_v49 = vmul.f32 %v3131_v19, %v1332_v27  ;;  %vm2400_vm6 = vcmask 97280  }
 0x398   : > { %1813 = vmatprep.mubr.f32.mxu0 %v3329_v20 }
 0x399   : > { %1588 = vrot.lane.b32.xlu1 %v1573_v1, %s2788_s8  ;;  %1400 = vrot.lane.b32.xlu0 %v1389_v11, %s2801_s14  ;;  %v1610_v1 = vld [vmem:[#allocation2 + $0x30] sm:$0xf]  ;;  %v1386_v11 = vrot.slane %v1374_v24, 4 }
 0x39b   : > { %v1387_v45 = vsel %vm817_vm5, %v3408_v9, %v1386_v11  ;;  %v2181_v11 = vld [vmem:[#allocation2 + $0x38] sm:$0xf] }
 0x39c   : > { %v2675_v34 = vpack.i.bf16 %v3408_v9, %v1387_v45  ;;  %v2094_v45 = vld [vmem:[#allocation2 + $0x38] sm:$0xf] }
 0x39d   : > { %1542 = vrot.lane.b32.xlu1 %v1532_v53, %s2790_s10  ;;  %1590 = vrot.lane.b32.xlu0 %v1574_v33, %s2788_s8  ;;  %v1623_v33 = vrot.slane %v1610_v1, 4  ;;  %v1340_v53 = vmul.f32 %v3129_v16, %v1334_v41  ;;  %v1337_v1 = vmul.f32 %v3129_v16, %v3345_v2 }
 0x39f   : > { %v1624_v12 = vsel %vm817_vm5, %v3364_v29, %v1623_v33  ;;  %v2187_v33 = vmul.f32 %v2986_v3, %v2181_v11 }
 0x3a1   : > { %1442 = vrot.lane.b32.xlu1 %v1426_v37, %s2789_s9  ;;  %1444 = vrot.lane.b32.xlu0 %v1427_v5, %s2789_s9  ;;  %v1463_v37 = vld [vmem:[#allocation2 + $0x30] sm:$0xf]  ;;  %v1391_v5 = vsel %vm817_vm5, %v3364_v29, %v1390_v51  ;;  %v2100_v51 = vmul.f32 %v2989_v44, %v2094_v45 }
 0x3a2   : > { %v1469_v25 = vmul.f32 %v3150_v18, %v1463_v37  ;;  %v3479_v37 = vpop.permute.xlu0 %1679 }
 0x3a4   : > { %v1483_v24 = vrot.slane %v1469_v25, 4 }
 0x3a5   : > { %1633 = vrot.lane.b32.xlu1 %v1622_v46, %s2797_s20  ;;  %1546 = vrot.lane.b32.xlu0 %v1535_v35, %s2790_s10  ;;  %v1336_v35 = vmul.f32 %v3337_v40, %v3145_v31 }
 0x3a6   : > { %v1484_v46 = vsel %vm817_vm5, %v1478_v57, %v1483_v24  ;;  %v2136_v57 = vld [vmem:[#allocation2 + $0x38] sm:$0xf]  ;;  %v3491_v44 = vpop.permute.xlu0 %2671 }
 0x3a7   : > { %v2150_v0 = vrot.slane %v2136_v57, 4 }
 0x3a9   : > { %1677 = vrot.lane.b32.xlu1 %v1661_v55, %s2793_s12  ;;  %1493 = vrot.lane.b32.xlu0 %v1482_v10, %s2787_s30  ;;  %v2581_v55 = vld [vmem:[%s3814_s4 + $0x18] sm:$0xf]  ;;  %v2151_v10 = vsel %vm817_vm5, %v3408_v9, %v2150_v0 }
 0x3aa   : > { %v2680_v43 = vpack.i.bf16 %v3408_v9, %v2151_v10  ;;  %v3498_v21 = vpop.permute.xlu0 %1586 }
 0x3ad   : > { %1635 = vrot.lane.b32.xlu1 %v1624_v12, %s2797_s20  ;;  %1548 = vrot.lane.b32.xlu0 %v1537_v23, %s2790_s10  ;;  %v2049_v12 = vmul.f32 %v3005_v56, %v2043_v32  ;;  %v1986_v23 = vld [vmem:[#allocation2 + $0x20] sm:$0xf] }
 0x3ae   : > { %v1545_v25 = vpop.permute.xlu0 %1544 }
 0x3af   : > { %v2063_v3 = vrot.slane %v2049_v12, 4 }
 0x3b1   : > { %1402 = vrot.lane.b32.xlu1 %v1391_v5, %s2801_s14  ;;  %2676 = vrot.lane.b32.xlu0 %v2675_v34, %s2801_s14  ;;  %v1992_v34 = vmul.f32 %v3012_v62, %v1986_v23  ;;  %v2064_v56 = vsel %vm817_vm5, %v3026_v7, %v2063_v3 }
 0x3b3   : > { %v2004_v5 = vrot.slane %v1992_v34, 4 }
 0x3b5   : > { %1357 = vrot.lane.b32.xlu0 %v1340_v53, %s2792_s11  ;;  %1355 = vrot.lane.b32.xlu1 %v1339_v52, %s2792_s11  ;;  %v3506_v53 = vpop.permute.xlu0 %1491 }
 0x3b9   : > { %1396 = vrot.lane.b32.xlu0 %v3364_v29, %s2801_s14  ;;  %1495 = vrot.lane.b32.xlu1 %v1484_v46, %s2787_s30  ;;  %v3451_v29 = vmul.f32 %v3329_v20, %v3131_v19  ;;  %v1486_v24 = vpop.permute.xlu0 %1485 }
 0x3bd   : > { %1349 = vrot.lane.b32.xlu0 %v1336_v35, %s2792_s11  ;;  %1394 = vrot.lane.b32.xlu1 %v3348_v13, %s2801_s14  ;;  %v2580_v13 = vld [vmem:[%s3814_s4 + $0x10] sm:$0xff] }
 0x3c1   : > { %1347 = vrot.lane.b32.xlu0 %v3451_v29, %s2792_s11  ;;  %1353 = vrot.lane.b32.xlu1 %v1338_v49, %s2792_s11 }
 0x3c5   : > { %1729 = vperm.xlu0 %2669, %v2580_v13   ;;  %1351 = vrot.lane.b32.xlu1 %v1337_v1, %s2792_s11  ;;  %v2674_v13 = vunpack.i.h.bf16 %v3491_v44 }
 0x3c9   : > { %2204 = vrot.lane.b32.xlu0 %v2187_v33, %s2793_s12  ;;  %1734 = vperm.xlu1 %2628, %v2581_v55  }
 0x3cd   : > { %2681 = vrot.lane.b32.xlu0 %v2680_v43, %s2797_s20  ;;  %2198 = vrot.lane.b32.xlu1 %v2997_v50, %s2793_s12  ;;  %v1944_v50 = vld [vmem:[#allocation2 + $0x20] sm:$0xf] }
 0x3ce   : > { %2690 = vset.pattern.permute.xlu1 %v2791_v26  ;;  %v3489_v26 = vpop.permute.xlu1 %1673  ;;  %v1950_v62 = vmul.f32 %v3021_v4, %v1944_v50 }
 0x3d1   : > { %2111 = vrot.lane.b32.xlu0 %v3024_v6, %s2788_s8  ;;  %2117 = vrot.lane.b32.xlu1 %v2100_v51, %s2788_s8  ;;  %v2005_v6 = vsel %vm817_vm5, %v3036_v17, %v2004_v5 }
 0x3d2   : > { %v1593_v41 = vpop.permute.xlu1 %1592 }
 0x3d5   : > { %2069 = vrot.lane.b32.xlu0 %v3026_v7, %s2790_s10  ;;  %2075 = vrot.lane.b32.xlu1 %v2064_v56, %s2790_s10 }
 0x3d6   : > { %v3504_v7 = vpop.permute.xlu1 %1550 }
 0x3d9   : > { %2016 = vrot.lane.b32.xlu0 %v2005_v6, %s2787_s30  ;;  %1965 = vrot.lane.b32.xlu1 %v1950_v62, %s2789_s9 }
 0x3da   : > { %v1441_v4 = vpop.permute.xlu1 %1440 }
 0x3dd   : > { %2010 = vrot.lane.b32.xlu0 %v3036_v17, %s2787_s30  ;;  %1959 = vrot.lane.b32.xlu1 %v3042_v22, %s2789_s9 }
 0x3de   : > { %v1435_v52 = vpop.permute.xlu1 %1434 }
 0x3f3   : > { %v3508_v46 = vpop.permute.xlu1 %1582  ;;  %v1670_v35 = vpop.permute.xlu0 %1669 }
 0x3f7   : > { %v3510_v27 = vpop.permute.xlu1 %1436  ;;  %v1628_v49 = vpop.permute.xlu0 %1627 }
 0x3f8   : > { %v3514_v17 = vsel %vm458_vm9, %v1435_v52, %v3510_v27 }
 0x3fb   : > { %v3516_v57 = vpop.permute.xlu1 %1584  ;;  %v1672_v22 = vpop.permute.xlu0 %1671 }
 0x3ff   : > { %v1541_v0 = vpop.permute.xlu1 %1540  ;;  %v1630_v1 = vpop.permute.xlu0 %1629 }
 0x400   : > { %v1639_v11 = vsel %vm434_vm15, %v1628_v49, %v1630_v1  ;;  %v1640_v55 = vsel %vm434_vm15, %v1630_v1, %v2674_v13 }
 0x401   : > { %1647 = vst [vmem:[#allocation3 + $0xd0] sm:$0xf0] %v1639_v11  ;;  %1648 = vst [vmem:[#allocation3 + $0xa8] sm:$0xf0] %v1640_v55 }
 0x403   : > { %v1488_v10 = vpop.permute.xlu1 %1487  ;;  %v3521_v33 = vpop.permute.xlu0 %1438 }
 0x404   : > { %v1497_v43 = vsel %vm442_vm7, %v1486_v24, %v1488_v10 }
 0x405   : > { %1505 = vst [vmem:[#allocation3 + $0x80] sm:$0xf0] %v1497_v43 }
 0x407   : > { %v1676_v32 = vpop.permute.xlu1 %1675  ;;  %v1490_v45 = vpop.permute.xlu0 %1489 }
 0x408   : > { %v1498_v12 = vsel %vm442_vm7, %v1488_v10, %v1490_v45 }
 0x409   : > { %1506 = vst [vmem:[#allocation3 + $0x88] sm:$0xf0] %v1498_v12 }
 0x40b   : > { %v1589_v23 = vpop.permute.xlu1 %1588  ;;  %v3525_v51 = vpop.permute.xlu0 %1400 }
 0x40f   : > { %v1543_v3 = vpop.permute.xlu1 %1542  ;;  %v1591_v34 = vpop.permute.xlu0 %1590 }
 0x410   : > { %v1552_v56 = vsel %vm379_vm10, %v1541_v0, %v1543_v3  ;;  %v1553_v5 = vsel %vm379_vm10, %v1543_v3, %v1545_v25  ;;  %v1596_v50 = vsel %vm403_vm8, %v1589_v23, %v1591_v34  ;;  %v1597_v62 = vsel %vm403_vm8, %v1591_v34, %v1593_v41 }
 0x411   : > { %1560 = vst [vmem:[#allocation3 + $0x78] sm:$0xf0] %v1552_v56  ;;  %1561 = vst [vmem:[#allocation3 + $0xb8] sm:$0xf0] %v1553_v5  ;;  %v2673_v23 = vunpack.i.l.bf16 %v3491_v44  ;;  %v1682_v3 = vsel %vm368_vm12, %v1672_v22, %v3489_v26 }
 0x412   : > { %1604 = vst [vmem:[#allocation3 + $0xd0] sm:$0xf] %v1596_v50  ;;  %1605 = vst [vmem:[#allocation3 + $0xa8] sm:$0xf] %v1597_v62 }
 0x413   : > { %v1443_v6 = vpop.permute.xlu1 %1442  ;;  %v1445_v52 = vpop.permute.xlu0 %1444 }
 0x414   : > { %v1448_v24 = vsel %vm458_vm9, %v1441_v4, %v1443_v6  ;;  %v1449_v49 = vsel %vm458_vm9, %v1443_v6, %v1445_v52 }
 0x415   : > { %1456 = vst [vmem:[#allocation3 + $0x80] sm:$0xf] %v1448_v24  ;;  %1457 = vst [vmem:[#allocation3 + $0x88] sm:$0xf] %v1449_v49 }
 0x417   : > { %v1634_v13 = vpop.permute.xlu1 %1633  ;;  %v1547_v0 = vpop.permute.xlu0 %1546 }
 0x419   : > { %v1717_v44 = vld [vmem:[#allocation3 + $0xa8] sm:$0xff]  ;;  %v1716_v26 = vld [vmem:[#allocation3 + $0xd0] sm:$0xff] }
 0x41b   : > { %v1678_v1 = vpop.permute.xlu1 %1677  ;;  %v1494_v25 = vpop.permute.xlu0 %1493 }
 0x41c   : > { %v1683_v11 = vsel %vm368_vm12, %v1676_v32, %v1678_v1  ;;  %v1684_v41 = vsel %vm368_vm12, %v1678_v1, %v3479_v37  ;;  %v1681_v37 = vsel %vm368_vm12, %v1670_v35, %v1672_v22  ;;  %v1595_v35 = vsel %vm403_vm8, %v3516_v57, %v3498_v21 }
 0x41d   : > { %1691 = vst [vmem:[#allocation3 + $0xc8] sm:$0xf] %v1683_v11  ;;  %1692 = vst [vmem:[#allocation3 + $0x70] sm:$0xf] %v1684_v41  ;;  %v1594_v22 = vsel %vm403_vm8, %v3508_v46, %v3516_v57  ;;  %v1711_v11 = vld [vmem:[#allocation3 + $0xb8] sm:$0xff]  ;;  %v1499_v41 = vsel %vm442_vm7, %v3506_v53, %v1494_v25 }
 0x41e   : > { %v1710_v46 = vld [vmem:[#allocation3 + $0x78] sm:$0xff] }
 0x41f   : > { %v1636_v55 = vpop.permute.xlu1 %1635  ;;  %v1549_v10 = vpop.permute.xlu0 %1548 }
 0x420   : > { %v1642_v56 = vsel %vm434_vm15, %v1636_v55, %v2673_v23  ;;  %v1641_v50 = vsel %vm434_vm15, %v1634_v13, %v1636_v55  ;;  %v1555_v6 = vsel %vm379_vm10, %v1549_v10, %v3504_v7  ;;  %v1554_v24 = vsel %vm379_vm10, %v1547_v0, %v1549_v10  ;;  %v1705_v10 = vld [vmem:[#allocation3 + $0x88] sm:$0xff] }
 0x423   : > { %v1403_v43 = vpop.permute.xlu1 %1402  ;;  %v3536_v45 = vpop.permute.xlu0 %2676 }
 0x424   : > { %v1723_v4 = vld [vmem:[#allocation3 + $0x70] sm:$0xf]  ;;  %v1722_v12 = vld [vmem:[#allocation3 + $0xc8] sm:$0xf]  ;;  %v2679_v52 = vunpack.i.h.bf16 %v3536_v45 }
 0x425   : > { %2582 = vmatprep.subr.msk.mxu0 %vm817_vm5, %v1723_v4  ;;  %v2678_v4 = vunpack.i.l.bf16 %v3536_v45 }
 0x426   : > { %2583 = vmatpush1.msk.msra.mxu0 %vm817_vm5, %v1722_v12  ;;  %v1704_v12 = vld [vmem:[#allocation3 + $0x80] sm:$0xff] }
 0x427   : > { %v1356_v32 = vpop.permute.xlu1 %1355  ;;  %1755 = vmatprep.subr.mxu0 %v1682_v3  ;;  %v1358_v34 = vpop.permute.xlu0 %1357  ;;  %v1406_v53 = vsel %vm839_vm13, %v2678_v4, %v3525_v51 }
 0x428   : > { %v1362_v5 = vsel %vm490_vm11, %v1356_v32, %v1358_v34  ;;  %1756 = vmatpush1.msra.mxu0 %v1681_v37 }
 0x429   : > { %1370 = vst [vmem:[#allocation3 + $0x18] sm:$0xf] %v1362_v5  ;;  %1757 = vmatprep.subr.mxu0 %v1642_v56 }
 0x42a   : > { %1758 = vmatpush1.msra.mxu0 %v1641_v50 }
 0x42b   : > { %v1496_v62 = vpop.permute.xlu1 %1495  ;;  %1759 = vmatprep.subr.mxu0 %v1717_v44  ;;  %v1397_v49 = vpop.permute.xlu0 %1396 }
 0x42c   : > { %1760 = vmatpush1.msra.mxu0 %v1716_v26  ;;  %v1500_v57 = vsel %vm442_vm7, %v1494_v25, %v1496_v62 }
 0x42d   : > { %1761 = vmatprep.subr.mxu0 %v1595_v35 }
 0x42e   : > { %1762 = vmatpush1.msra.mxu0 %v1594_v22 }
 0x42f   : > { %v1395_v13 = vpop.permute.xlu1 %1394  ;;  %1763 = vmatprep.subr.mxu0 %v1555_v6  ;;  %v1350_v55 = vpop.permute.xlu0 %1349 }
 0x430   : > { %v1404_v1 = vsel %vm839_vm13, %v2679_v52, %v1395_v13  ;;  %v1405_v21 = vsel %vm839_vm13, %v1395_v13, %v1397_v49  ;;  %1764 = vmatpush1.msra.mxu0 %v1554_v24 }
 0x431   : > { %1412 = vst [vmem:[#allocation3 + $0xd8] sm:$0xf0] %v1404_v1  ;;  %1413 = vst [vmem:[#allocation3 + $0x18] sm:$0xf0] %v1405_v21  ;;  %1765 = vmatprep.subr.mxu0 %v1711_v11 }
 0x432   : > { %1766 = vmatpush1.msra.mxu0 %v1710_v46 }
 0x433   : > { %v1354_v7 = vpop.permute.xlu1 %1353  ;;  %1767 = vmatprep.subr.mxu0 %v3345_v2  ;;  %v1447_v2 = vsel %vm458_vm9, %v3510_v27, %v3521_v33  ;;  %v1348_v23 = vpop.permute.xlu0 %1347  ;;  %v2578_v27 = vld [vmem:[%s3813_s3 + $0x10] sm:$0xff] }
 0x434   : > { %v1361_v0 = vsel %vm490_vm11, %v1354_v7, %v1356_v32  ;;  %1768 = vmatpush1.msra.mxu0 %v3337_v40  ;;  %v1407_v40 = vsel %vm839_vm13, %v3525_v51, %v1403_v43  ;;  %v1359_v33 = vsel %vm490_vm11, %v1348_v23, %v1350_v55 }
 0x435   : > { %1369 = vst [vmem:[#allocation3 + $0xd8] sm:$0xf] %v1361_v0  ;;  %1769 = vmatprep.subr.mxu0 %v1500_v57 }
 0x436   : > { %1770 = vmatpush1.msra.mxu0 %v1499_v41 }
 0x437   : > { %1771 = vmatprep.subr.mxu0 %v1705_v10  ;;  %v1352_v25 = vpop.permute.xlu1 %1351 }
 0x438   : > { %1772 = vmatpush1.msra.mxu0 %v1704_v12  ;;  %v1699_v45 = vld [vmem:[#allocation3 + $0x18] sm:$0xff]  ;;  %v1360_v37 = vsel %vm490_vm11, %v1350_v55, %v1352_v25 }
 0x439   : > { %1773 = vmatprep.subr.mxu0 %v1447_v2 }
 0x43a   : > { %1774 = vmatpush1.msra.mxu0 %v3514_v17  ;;  %v2579_v17 = vld [vmem:[%s3813_s3 + $0x18] sm:$0xf] }
 0x43b   : > { %1775 = vmatprep.subr.mxu0 %v1407_v40 }
 0x43c   : > { %1776 = vmatpush1.msra.mxu0 %v1406_v53  ;;  %v1698_v3 = vld [vmem:[#allocation3 + $0xd8] sm:$0xff] }
 0x43d   : > { %1777 = vmatprep.subr.mxu0 %v1699_v45 }
 0x43e   : > { %1778 = vmatpush1.msra.mxu0 %v1698_v3 }
 0x43f   : > { %1779 = vmatprep.subr.mxu0 %v1360_v37 }
 0x440   : > { %1780 = vmatpush1.msra.mxu0 %v1359_v33  ;;  %v1730_v32 = vpop.permute.xlu0 %1729 }
 0x441   : > { %2584 = vmatmul.mubr.msk.f32.vlgmr.msra.gmra.mxu0 %vm1211_vm14, %v2578_v27 }
 0x442   : > { %1819 = vmatprep.mubr.f32.mxu0 %v3329_v20 }
 0x444   : > { %v1735_v62 = vpop.permute.xlu1 %1734 }
 0x445   : > { %2585 = vmatmul.mubr.msk.f32.gmra.mxu0 %vm1211_vm14, %v2579_v17 }
 0x446   : > { %2474 = vmatprep.mubr.f32.mxu0 %v3329_v20 }
 0x457   : > { %v3586_v51 = vpop.f32.mrf.mxu0 }
 0x459   : > { %v3588_v43 = vpop.f32.mrf.mxu0 }
 0x501   : > { %v1815_v34 = vpop.f32.mrf.mxu0 }
 0x502   : > { %v1816_v56 = vadd.f32 %v1815_v34, %v1730_v32 }
 0x503   : > { %v1817_v5 = vpop.f32.mrf.mxu0 }
 0x504   : > { %v1826_v50 = vsub.f32 0.0, %v1816_v56  ;;  %v1818_v44 = vadd.f32 %v1817_v5, %v1730_v32 }
 0x505   : > { %v1821_v26 = vpop.f32.mrf.mxu0 }
 0x506   : > { %v1830_v35 = vmul.f32 1.442695, %v1826_v50  ;;  %v1827_v22 = vsub.f32 0.0, %v1818_v44  ;;  %v1822_v6 = vadd.f32 %v1821_v26, %v1735_v62 }
 0x507   : > { %v1823_v52 = vpop.f32.mrf.mxu0 }
 0x508   : > { %2726 = vpow2.f32 %v1830_v35  ;;  %v1832_v24 = vmul.f32 1.442695, %v1827_v22  ;;  %v1828_v49 = vsub.f32 0.0, %v1822_v6  ;;  %v1824_v20 = vadd.f32 %v1823_v52, %v1735_v62 }
 0x50a   : > { %2728 = vpow2.f32 %v1832_v24  ;;  %v1834_v13 = vmul.f32 1.442695, %v1828_v49  ;;  %v1829_v1 = vsub.f32 0.0, %v1824_v20 }
 0x50c   : > { %2730 = vpow2.f32 %v1834_v13  ;;  %v1836_v21 = vmul.f32 1.442695, %v1829_v1 }
 0x50e   : > { %2732 = vpow2.f32 %v1836_v21 }
 0x515   : > { %v2727_v11 = vpop.eup %2726 }
 0x516   : > { %v1838_v46 = vadd.f32 1.0, %v2727_v11 }
 0x517   : > { %v2729_v7 = vpop.eup %2728 }
 0x518   : > { %2734 = vrcp.f32 %v1838_v46  ;;  %v1839_v57 = vadd.f32 1.0, %v2729_v7 }
 0x519   : > { %v2731_v0 = vpop.eup %2730 }
 0x51a   : > { %2736 = vrcp.f32 %v1839_v57  ;;  %v1840_v41 = vadd.f32 1.0, %v2731_v0 }
 0x51b   : > { %v2733_v55 = vpop.eup %2732 }
 0x51c   : > { %2738 = vrcp.f32 %v1840_v41  ;;  %v1841_v10 = vadd.f32 1.0, %v2733_v55 }
 0x51e   : > { %2740 = vrcp.f32 %v1841_v10 }
 0x525   : > { %v2735_v4 = vpop.eup %2734 }
 0x526   : > { %v3590_v12 = vmul.f32 %v2735_v4, %v1816_v56 }
 0x527   : > { %v2737_v2 = vpop.eup %2736 }
 0x528   : > { %1850 = vst [vmem:[#allocation2 + $0x8] sm:$0xff] %v3590_v12  ;;  %v3593_v40 = vmul.f32 %v2737_v2, %v1818_v44  ;;  %v2182_v53 = vmul.f32 %v3064_v42, %v3590_v12  ;;  %v2095_v25 = vmul.f32 %v3085_v39, %v3590_v12  ;;  %v3603_v27 = vrot.slane %v3590_v12, 4 }
 0x529   : > { %v2739_v23 = vpop.eup %2738  ;;  %v1948_v33 = vmul.f32 %v3590_v12, %v3123_v15  ;;  %v2044_v34 = vmul.f32 %v3140_v30, %v3590_v12  ;;  %v1990_v50 = vmul.f32 %v3590_v12, %v3180_v14 }
 0x52a   : > { %1851 = vst [vmem:[#allocation2 + $0x10] sm:$0xff] %v3593_v40  ;;  %v1848_v45 = vmul.f32 %v2739_v23, %v1822_v6  ;;  %2194 = vrot.lane.b32.xlu0 %v2182_v53, %s2793_s12  ;;  %2107 = vrot.lane.b32.xlu1 %v2095_v25, %s2788_s8  ;;  %v2183_v17 = vmul.f32 %v3593_v40, %v3074_v48  ;;  %v3619_v56 = vrot.slane %v3593_v40, 4 }
 0x52b   : > { %v2741_v3 = vpop.eup %2740  ;;  %v2096_v32 = vmul.f32 %v3593_v40, %v3095_v61  ;;  %v2056_v5 = vrot.slane %v2044_v34, 4  ;;  %v1949_v44 = vmul.f32 %v3110_v8, %v3593_v40  ;;  %v2002_v62 = vrot.slane %v1990_v50, 4 }
 0x52c   : > { %2036 = vst [vmem:[#allocation3 + $0x78] sm:$0xf] %v1848_v45  ;;  %1852 = vst [vmem:[#allocation2 + $0x28] sm:$0xf] %v1848_v45  ;;  %v1849_v37 = vmul.f32 %v2741_v3, %v1824_v20  ;;  %v3630_v26 = vmul.f32 %v3150_v18, %v3593_v40  ;;  %v2045_v13 = vmul.f32 %v3593_v40, %v3157_v47 }
 0x52e   : > { %2037 = vst [vmem:[#allocation3 + $0xb8] sm:$0xf] %v1849_v37  ;;  %1853 = vst [vmem:[#allocation2 + $0x30] sm:$0xf] %v1849_v37  ;;  %2152 = vrot.lane.b32.xlu0 %v3603_v27, %s2797_s20  ;;  %1961 = vrot.lane.b32.xlu1 %v1948_v33, %s2789_s9  ;;  %v2003_v6 = vrot.slane %v3630_v26, 4  ;;  %v2057_v11 = vrot.slane %v2045_v13, 4 }
 0x532   : > { %2196 = vrot.lane.b32.xlu0 %v2183_v17, %s2793_s12  ;;  %2109 = vrot.lane.b32.xlu1 %v2096_v32, %s2788_s8 }
 0x533   : > { %v2179_v35 = vld [vmem:[#allocation2 + $0x28] sm:$0xf] }
 0x534   : > { %v1900_v22 = vld [vmem:[#allocation2 + $0x28] sm:$0xf]  ;;  %v2185_v52 = vmul.f32 %v3064_v42, %v2179_v35 }
 0x535   : > { %v2092_v24 = vld [vmem:[#allocation2 + $0x28] sm:$0xf]  ;;  %v1913_v49 = vrot.slane %v1900_v22, 4  ;;  %v2093_v21 = vld [vmem:[#allocation2 + $0x30] sm:$0xf] }
 0x536   : > { %2154 = vrot.lane.b32.xlu0 %v3619_v56, %s2797_s20  ;;  %2065 = vrot.lane.b32.xlu1 %v2056_v5, %s2790_s10  ;;  %v2098_v20 = vmul.f32 %v3085_v39, %v2092_v24  ;;  %v2041_v42 = vld [vmem:[#allocation2 + $0x28] sm:$0xf]  ;;  %v2099_v46 = vmul.f32 %v2093_v21, %v3095_v61  ;;  %v1946_v57 = vld [vmem:[#allocation2 + $0x30] sm:$0xf] }
 0x537   : > { %v1914_v1 = vsel %vm817_vm5, %v3603_v27, %v1913_v49  ;;  %v1945_v7 = vld [vmem:[#allocation2 + $0x28] sm:$0xf]  ;;  %v2047_v0 = vmul.f32 %v3140_v30, %v2041_v42  ;;  %v1952_v10 = vmul.f32 %v3110_v8, %v1946_v57  ;;  %v2042_v61 = vld [vmem:[#allocation2 + $0x30] sm:$0xf]  ;;  %v1899_v30 = vld [vmem:[#allocation2 + $0x20] sm:$0xf] }
 0x538   : > { %v2134_v39 = vld [vmem:[#allocation2 + $0x28] sm:$0xf]  ;;  %v1951_v55 = vmul.f32 %v1945_v7, %v3123_v15  ;;  %v2180_v45 = vld [vmem:[#allocation2 + $0x30] sm:$0xf]  ;;  %v2048_v15 = vmul.f32 %v2042_v61, %v3157_v47 }
 0x539   : > { %v1987_v41 = vld [vmem:[#allocation2 + $0x28] sm:$0xf]  ;;  %v2146_v4 = vrot.slane %v2134_v39, 4  ;;  %v2059_v2 = vrot.slane %v2047_v0, 4  ;;  %v2135_v8 = vld [vmem:[#allocation2 + $0x30] sm:$0xf]  ;;  %v2186_v37 = vmul.f32 %v2180_v45, %v3074_v48 }
 0x53a   : > { %1963 = vrot.lane.b32.xlu0 %v1949_v44, %s2789_s9  ;;  %2012 = vrot.lane.b32.xlu1 %v2002_v62, %s2787_s30  ;;  %v1993_v53 = vmul.f32 %v1987_v41, %v3180_v14  ;;  %v1911_v14 = vrot.slane %v1899_v30, 4  ;;  %v2148_v17 = vrot.slane %v2135_v8, 4  ;;  %v2061_v32 = vrot.slane %v2048_v15, 4  ;;  %v1901_v34 = vld [vmem:[#allocation2 + $0x30] sm:$0xf] }
 0x53b   : > { %v2147_v25 = vsel %vm817_vm5, %v3603_v27, %v2146_v4  ;;  %v2060_v23 = vsel %vm817_vm5, %v2056_v5, %v2059_v2  ;;  %v1915_v44 = vrot.slane %v1901_v34, 4  ;;  %v1858_v22 = vld [vmem:[#allocation2 + $0x28] sm:$0xf] }
 0x53c   : > { %v2006_v3 = vrot.slane %v1993_v53, 4  ;;  %v1912_v47 = vsel %vm817_vm5, %v3408_v9, %v1911_v14  ;;  %v2149_v5 = vsel %vm817_vm5, %v3619_v56, %v2148_v17  ;;  %v2062_v50 = vsel %vm817_vm5, %v2057_v11, %v2061_v32 }
 0x53d   : > { %v2685_v48 = vpack.i.bf16 %v3408_v9, %v1912_v47  ;;  %v1916_v35 = vsel %vm817_vm5, %v3619_v56, %v1915_v44  ;;  %v1864_v49 = vmul.f32 %v1858_v22, %v3145_v31 }
 0x53e   : > { %2014 = vrot.lane.b32.xlu0 %v2003_v6, %s2787_s30  ;;  %2200 = vrot.lane.b32.xlu1 %v2185_v52, %s2793_s12  ;;  %v2007_v33 = vsel %vm817_vm5, %v2002_v62, %v2006_v3  ;;  %v1988_v62 = vld [vmem:[#allocation2 + $0x30] sm:$0xf] }
 0x53f   : > { %v1859_v52 = vld [vmem:[#allocation2 + $0x30] sm:$0xf]  ;;  %v1994_v24 = vmul.f32 %v3150_v18, %v1988_v62  ;;  %v1861_v18 = vmul.f32 %v3590_v12, %v3145_v31  ;;  %v1862_v31 = vmul.f32 %v3129_v16, %v3593_v40 }
 0x541   : > { %v2008_v13 = vrot.slane %v1994_v24, 4 }
 0x542   : > { %2113 = vrot.lane.b32.xlu1 %v2098_v20, %s2788_s8  ;;  %1925 = vrot.lane.b32.xlu0 %v1914_v1, %s2801_s14  ;;  %v1865_v20 = vmul.f32 %v3129_v16, %v1859_v52  ;;  %v1857_v1 = vld [vmem:[#allocation2 + $0x20] sm:$0xf] }
 0x543   : > { %v2009_v9 = vsel %vm817_vm5, %v2003_v6, %v2008_v13  ;;  %v1863_v21 = vmul.f32 %v3131_v19, %v1857_v1  ;;  %v2205_v19 = vpop.permute.xlu0 %2204 }
 0x546   : > { %2067 = vrot.lane.b32.xlu1 %v2057_v11, %s2790_s10  ;;  %2115 = vrot.lane.b32.xlu0 %v2099_v46, %s2788_s8 }
 0x547   : > { %v3706_v26 = vpop.permute.xlu0 %2681 }
 0x548   : > { %v2684_v30 = vunpack.i.h.bf16 %v3706_v26 }
 0x54a   : > { %1967 = vrot.lane.b32.xlu1 %v1951_v55, %s2789_s9  ;;  %1969 = vrot.lane.b32.xlu0 %v1952_v10, %s2789_s9 }
 0x54e   : > { %2158 = vrot.lane.b32.xlu1 %v2147_v25, %s2797_s20  ;;  %2071 = vrot.lane.b32.xlu0 %v2060_v23, %s2790_s10 }
 0x552   : > { %2202 = vrot.lane.b32.xlu1 %v2186_v37, %s2793_s12  ;;  %2018 = vrot.lane.b32.xlu0 %v2007_v33, %s2787_s30 }
 0x556   : > { %2160 = vrot.lane.b32.xlu1 %v2149_v5, %s2797_s20  ;;  %2073 = vrot.lane.b32.xlu0 %v2062_v50, %s2790_s10 }
 0x55a   : > { %1927 = vrot.lane.b32.xlu1 %v1916_v35, %s2801_s14  ;;  %2686 = vrot.lane.b32.xlu0 %v2685_v48, %s2801_s14 }
 0x55e   : > { %1880 = vrot.lane.b32.xlu1 %v1864_v49, %s2792_s11  ;;  %1882 = vrot.lane.b32.xlu0 %v1865_v20, %s2792_s11 }
 0x562   : > { %2020 = vrot.lane.b32.xlu1 %v2009_v9, %s2787_s30  ;;  %1921 = vrot.lane.b32.xlu0 %v3619_v56, %s2801_s14  ;;  %v693_v56 = vld [vmem:[%s3812_s2 + $0x10] sm:$0xff] }
 0x566   : > { %1919 = vrot.lane.b32.xlu1 %v3603_v27, %s2801_s14  ;;  %1874 = vrot.lane.b32.xlu0 %v1861_v18, %s2792_s11  ;;  %v2199_v27 = vpop.permute.xlu1 %2198 }
 0x56a   : > { %1878 = vrot.lane.b32.xlu1 %v1863_v21, %s2792_s11  ;;  %1872 = vrot.lane.b32.xlu0 %v3451_v29, %s2792_s11  ;;  %v2118_v6 = vpop.permute.xlu1 %2117  ;;  %v2112_v29 = vpop.permute.xlu0 %2111 }
 0x56e   : > { %1876 = vrot.lane.b32.xlu1 %v1862_v31, %s2792_s11  ;;  %706 = vperm.xlu0 %2669, %v693_v56   ;;  %v3708_v42 = vpop.permute.xlu1 %2075  ;;  %v2070_v11 = vpop.permute.xlu0 %2069  ;;  %v2683_v31 = vunpack.i.l.bf16 %v3706_v26 }
 0x572   : > { %528 = vperm.xlu1 %2690, %v3442_v54   ;;  %v1966_v46 = vpop.permute.xlu1 %1965  ;;  %v2017_v7 = vpop.permute.xlu0 %2016 }
 0x576   : > { %2691 = vset.pattern.permute.xlu1 %v2800_v58  ;;  %v1960_v57 = vpop.permute.xlu1 %1959  ;;  %v2011_v16 = vpop.permute.xlu0 %2010 }
 0x59c   : > { %v2195_v0 = vpop.permute.xlu0 %2194  ;;  %v2108_v39 = vpop.permute.xlu1 %2107 }
 0x5a0   : > { %v2153_v41 = vpop.permute.xlu0 %2152  ;;  %v1962_v55 = vpop.permute.xlu1 %1961 }
 0x5a1   : > { %v3711_v54 = vsel %vm458_vm9, %v1960_v57, %v1962_v55 }
 0x5a4   : > { %v2197_v58 = vpop.permute.xlu0 %2196  ;;  %v2110_v10 = vpop.permute.xlu1 %2109 }
 0x5a5   : > { %v3714_v4 = vsel %vm368_vm12, %v2195_v0, %v2197_v58  ;;  %v2207_v2 = vsel %vm368_vm12, %v2197_v58, %v2199_v27  ;;  %v3718_v53 = vsel %vm403_vm8, %v2108_v39, %v2110_v10  ;;  %v3721_v61 = vsel %vm403_vm8, %v2110_v10, %v2112_v29 }
 0x5a8   : > { %v2155_v25 = vpop.permute.xlu0 %2154  ;;  %v2066_v23 = vpop.permute.xlu1 %2065 }
 0x5a9   : > { %v2164_v45 = vsel %vm434_vm15, %v2153_v41, %v2155_v25  ;;  %v2165_v3 = vsel %vm434_vm15, %v2155_v25, %v2684_v30 }
 0x5aa   : > { %2172 = vst [vmem:[#allocation3 + $0xd0] sm:$0xf0] %v2164_v45  ;;  %2173 = vst [vmem:[#allocation3 + $0xa8] sm:$0xf0] %v2165_v3 }
 0x5ac   : > { %v1964_v15 = vpop.permute.xlu0 %1963  ;;  %v2013_v8 = vpop.permute.xlu1 %2012 }
 0x5ad   : > { %v3727_v14 = vsel %vm458_vm9, %v1962_v55, %v1964_v15  ;;  %v2022_v37 = vsel %vm442_vm7, %v2011_v16, %v2013_v8 }
 0x5ae   : > { %2030 = vst [vmem:[#allocation3 + $0x80] sm:$0xf0] %v2022_v37 }
 0x5b0   : > { %v2015_v33 = vpop.permute.xlu0 %2014  ;;  %v2201_v17 = vpop.permute.xlu1 %2200 }
 0x5b1   : > { %v2023_v32 = vsel %vm442_vm7, %v2013_v8, %v2015_v33 }
 0x5b2   : > { %2031 = vst [vmem:[#allocation3 + $0x88] sm:$0xf0] %v2023_v32 }
 0x5b4   : > { %v2114_v34 = vpop.permute.xlu1 %2113  ;;  %v1926_v47 = vpop.permute.xlu0 %1925 }
 0x5b8   : > { %v2068_v5 = vpop.permute.xlu1 %2067  ;;  %v2116_v50 = vpop.permute.xlu0 %2115 }
 0x5b9   : > { %v2077_v44 = vsel %vm379_vm10, %v2066_v23, %v2068_v5  ;;  %v2078_v48 = vsel %vm379_vm10, %v2068_v5, %v2070_v11  ;;  %v2121_v62 = vsel %vm403_vm8, %v2114_v34, %v2116_v50  ;;  %v2122_v35 = vsel %vm403_vm8, %v2116_v50, %v2118_v6 }
 0x5ba   : > { %2085 = vst [vmem:[#allocation3 + $0x78] sm:$0xf0] %v2077_v44  ;;  %2086 = vst [vmem:[#allocation3 + $0xb8] sm:$0xf0] %v2078_v48  ;;  %v2775_v48 = vld [vmem:[#allocation2] sm:$0xff] }
 0x5bb   : > { %2129 = vst [vmem:[#allocation3 + $0xd0] sm:$0xf] %v2121_v62  ;;  %2130 = vst [vmem:[#allocation3 + $0xa8] sm:$0xf] %v2122_v35 }
 0x5bc   : > { %v1968_v22 = vpop.permute.xlu1 %1967  ;;  %v1970_v52 = vpop.permute.xlu0 %1969 }
 0x5bd   : > { %v1973_v24 = vsel %vm458_vm9, %v1966_v46, %v1968_v22  ;;  %v1974_v49 = vsel %vm458_vm9, %v1968_v22, %v1970_v52  ;;  %v2589_v22 = vld [vmem:[%s3814_s4 + $0x28] sm:$0xf] }
 0x5be   : > { %1981 = vst [vmem:[#allocation3 + $0x80] sm:$0xf] %v1973_v24  ;;  %1982 = vst [vmem:[#allocation3 + $0x88] sm:$0xf] %v1974_v49 }
 0x5c0   : > { %v2159_v20 = vpop.permute.xlu1 %2158  ;;  %v2072_v13 = vpop.permute.xlu0 %2071 }
 0x5c1   : > { %v2236_v37 = vld [vmem:[#allocation3 + $0xb8] sm:$0xff] }
 0x5c2   : > { %v2241_v23 = vld [vmem:[#allocation3 + $0xd0] sm:$0xff]  ;;  %v2235_v33 = vld [vmem:[#allocation3 + $0x78] sm:$0xff] }
 0x5c4   : > { %v2203_v9 = vpop.permute.xlu1 %2202  ;;  %v2019_v18 = vpop.permute.xlu0 %2018 }
 0x5c5   : > { %v2208_v1 = vsel %vm368_vm12, %v2201_v17, %v2203_v9  ;;  %v2209_v21 = vsel %vm368_vm12, %v2203_v9, %v2205_v19  ;;  %v2024_v56 = vsel %vm442_vm7, %v2017_v7, %v2019_v18  ;;  %v2230_v34 = vld [vmem:[#allocation3 + $0x88] sm:$0xff]  ;;  %v2229_v5 = vld [vmem:[#allocation3 + $0x80] sm:$0xff] }
 0x5c6   : > { %2216 = vst [vmem:[#allocation3 + $0xc8] sm:$0xf] %v2208_v1  ;;  %2217 = vst [vmem:[#allocation3 + $0x70] sm:$0xf] %v2209_v21 }
 0x5c8   : > { %v2161_v27 = vpop.permute.xlu1 %2160  ;;  %v2074_v6 = vpop.permute.xlu0 %2073 }
 0x5c9   : > { %v2166_v29 = vsel %vm434_vm15, %v2159_v20, %v2161_v27  ;;  %v2167_v11 = vsel %vm434_vm15, %v2161_v27, %v2683_v31  ;;  %v2079_v46 = vsel %vm379_vm10, %v2072_v13, %v2074_v6  ;;  %v2080_v57 = vsel %vm379_vm10, %v2074_v6, %v3708_v42  ;;  %v2242_v42 = vld [vmem:[#allocation3 + $0xa8] sm:$0xff] }
 0x5cc   : > { %v1928_v16 = vpop.permute.xlu1 %1927  ;;  %v2687_v0 = vpop.permute.xlu0 %2686 }
 0x5cd   : > { %v1932_v19 = vsel %vm839_vm13, %v1926_v47, %v1928_v16  ;;  %v2688_v7 = vunpack.i.l.bf16 %v2687_v0  ;;  %v2248_v39 = vld [vmem:[#allocation3 + $0x70] sm:$0xf]  ;;  %v2247_v41 = vld [vmem:[#allocation3 + $0xc8] sm:$0xf] }
 0x5ce   : > { %2590 = vmatprep.subr.msk.mxu1 %vm817_vm5, %v2248_v39 }
 0x5cf   : > { %v1931_v26 = vsel %vm839_vm13, %v2688_v7, %v1926_v47  ;;  %2591 = vmatpush1.msk.msra.mxu1 %vm817_vm5, %v2247_v41 }
 0x5d0   : > { %2280 = vmatprep.subr.mxu1 %v2207_v2  ;;  %v1881_v55 = vpop.permute.xlu1 %1880  ;;  %v1883_v58 = vpop.permute.xlu0 %1882  ;;  %v2689_v2 = vunpack.i.h.bf16 %v2687_v0 }
 0x5d1   : > { %v1887_v10 = vsel %vm490_vm11, %v1881_v55, %v1883_v58  ;;  %2281 = vmatpush1.msra.mxu1 %v3714_v4 }
 0x5d2   : > { %1895 = vst [vmem:[#allocation3 + $0x18] sm:$0xf] %v1887_v10  ;;  %2282 = vmatprep.subr.mxu1 %v2167_v11 }
 0x5d3   : > { %2283 = vmatpush1.msra.mxu1 %v2166_v29 }
 0x5d4   : > { %v2021_v30 = vpop.permute.xlu1 %2020  ;;  %2284 = vmatprep.subr.mxu1 %v2242_v42  ;;  %v1922_v25 = vpop.permute.xlu0 %1921 }
 0x5d5   : > { %v2025_v45 = vsel %vm442_vm7, %v2019_v18, %v2021_v30  ;;  %2285 = vmatpush1.msra.mxu1 %v2241_v23 }
 0x5d6   : > { %2286 = vmatprep.subr.mxu1 %v3721_v61 }
 0x5d7   : > { %2287 = vmatpush1.msra.mxu1 %v3718_v53 }
 0x5d8   : > { %v1920_v3 = vpop.permute.xlu1 %1919  ;;  %2288 = vmatprep.subr.mxu1 %v2080_v57  ;;  %v1875_v15 = vpop.permute.xlu0 %1874 }
 0x5d9   : > { %v1929_v4 = vsel %vm839_vm13, %v2689_v2, %v1920_v3  ;;  %v1930_v8 = vsel %vm839_vm13, %v1920_v3, %v1922_v25  ;;  %2289 = vmatpush1.msra.mxu1 %v2079_v46 }
 0x5da   : > { %1937 = vst [vmem:[#allocation3 + $0xd8] sm:$0xf0] %v1929_v4  ;;  %1938 = vst [vmem:[#allocation3 + $0x18] sm:$0xf0] %v1930_v8  ;;  %2290 = vmatprep.subr.mxu1 %v2236_v37 }
 0x5db   : > { %2291 = vmatpush1.msra.mxu1 %v2235_v33 }
 0x5dc   : > { %v1879_v17 = vpop.permute.xlu1 %1878  ;;  %2292 = vmatprep.subr.mxu1 %v3593_v40  ;;  %v1873_v61 = vpop.permute.xlu0 %1872 }
 0x5dd   : > { %v1886_v53 = vsel %vm490_vm11, %v1879_v17, %v1881_v55  ;;  %v1884_v32 = vsel %vm490_vm11, %v1873_v61, %v1875_v15  ;;  %2293 = vmatpush1.msra.mxu1 %v3590_v12  ;;  %v2586_v12 = vld [vmem:[%s3813_s3 + $0x20] sm:$0xff] }
 0x5de   : > { %1894 = vst [vmem:[#allocation3 + $0xd8] sm:$0xf] %v1886_v53  ;;  %2294 = vmatprep.subr.mxu1 %v2025_v45 }
 0x5df   : > { %2295 = vmatpush1.msra.mxu1 %v2024_v56 }
 0x5e0   : > { %v1877_v47 = vpop.permute.xlu1 %1876  ;;  %2296 = vmatprep.subr.mxu1 %v2230_v34 }
 0x5e1   : > { %v1885_v50 = vsel %vm490_vm11, %v1875_v15, %v1877_v47  ;;  %2297 = vmatpush1.msra.mxu1 %v2229_v5  ;;  %v2224_v40 = vld [vmem:[#allocation3 + $0x18] sm:$0xff] }
 0x5e2   : > { %2298 = vmatprep.subr.mxu1 %v3727_v14 }
 0x5e3   : > { %2299 = vmatpush1.msra.mxu1 %v3711_v54  ;;  %v2587_v54 = vld [vmem:[%s3813_s3 + $0x28] sm:$0xf] }
 0x5e4   : > { %2300 = vmatprep.subr.mxu1 %v1932_v19 }
 0x5e5   : > { %2301 = vmatpush1.msra.mxu1 %v1931_v26  ;;  %v2223_v44 = vld [vmem:[#allocation3 + $0xd8] sm:$0xff] }
 0x5e6   : > { %2302 = vmatprep.subr.mxu1 %v2224_v40 }
 0x5e7   : > { %2303 = vmatpush1.msra.mxu1 %v2223_v44 }
 0x5e8   : > { %2304 = vmatprep.subr.mxu1 %v1885_v50 }
 0x5e9   : > { %2305 = vmatpush1.msra.mxu1 %v1884_v32  ;;  %v707_v24 = vpop.permute.xlu0 %706 }
 0x5ea   : > { %2592 = vmatmul.mubr.msk.f32.vlgmr.msra.gmra.mxu1 %vm1211_vm14, %v2586_v12 }
 0x5eb   : > { %2344 = vmatprep.mubr.f32.mxu1 %v2775_v48 }
 0x5ed   : > { %v529_v14 = vpop.permute.xlu1 %528 }
 0x5ee   : > { %v554_v62 = vmul.f32 %v2938_v60, %v529_v14  ;;  %v555_v35 = vmul.f32 %v2936_v59, %v529_v14  ;;  %2593 = vmatmul.mubr.msk.f32.gmra.mxu1 %vm1211_vm14, %v2587_v54  ;;  %v553_v52 = vmul.f32 %v2942_v63, %v529_v14  ;;  %v2394_v60 = vld [vmem:[%s3816_s6] sm:$0x7] }
 0x5ef   : > { %v2588_v59 = vld [vmem:[%s3814_s4 + $0x20] sm:$0xff] }
 0x5f0   : > { %580 = vrot.lane.b32.xlu1 %v554_v62, %s2792_s11  ;;  %582 = vrot.lane.b32.xlu0 %v555_v35, %s2792_s11 }
 0x5f4   : > { %578 = vrot.lane.b32.xlu0 %v553_v52, %s2792_s11  ;;  %2259 = vperm.xlu1 %2691, %v2589_v22   ;;  %v2383_v52 = vrot.slane %v3055_v36, 4 }
 0x5f8   : > { %2397 = vperm.xlu0 %2669, %v2394_v60   ;;  %2254 = vperm.xlu1 %2691, %v2588_v59   ;;  %v2380_v60 = vrot.slane %v3061_v38, 4 }
 0x662   : > { %v583_v49 = vpop.permute.xlu0 %582  ;;  %v581_v20 = vpop.permute.xlu1 %580 }
 0x663   : > { %v589_v9 = vsel %vm490_vm11, %v581_v20, %v583_v49 }
 0x664   : > { %v689_v18 = vadd.f32 %v3588_v43, %v589_v9 }
 0x666   : > { %v579_v13 = vpop.permute.xlu0 %578  ;;  %v714_v21 = vadd.f32 %v707_v24, %v689_v18 }
 0x667   : > { %v588_v63 = vsel %vm490_vm11, %v579_v13, %v581_v20 }
 0x668   : > { %v687_v1 = vadd.f32 %v3586_v51, %v588_v63  ;;  %v720_v27 = vsub.f32 0.0, %v714_v21  ;;  %v2375_v63 = vld [vmem:[%s3815_s5] sm:$0x7] }
 0x66a   : > { %v713_v56 = vadd.f32 %v707_v24, %v687_v1  ;;  %v731_v29 = vmul.f32 1.442695, %v720_v27 }
 0x66c   : > { %v719_v6 = vsub.f32 0.0, %v713_v56  ;;  %2742 = vpow2.f32 %v731_v29 }
 0x66e   : > { %v729_v46 = vmul.f32 1.442695, %v719_v6 }
 0x66f   : > { %v2260_v31 = vpop.permute.xlu1 %2259 }
 0x670   : > { %2744 = vpow2.f32 %v729_v46 }
 0x673   : > { %v2255_v11 = vpop.permute.xlu1 %2254  ;;  %v2398_v36 = vpop.permute.xlu0 %2397 }
 0x679   : > { %v2743_v23 = vpop.eup %2742 }
 0x67a   : > { %v738_v2 = vadd.f32 1.0, %v2743_v23 }
 0x67d   : > { %v2745_v45 = vpop.eup %2744 }
 0x67e   : > { %v737_v3 = vadd.f32 1.0, %v2745_v45 }
 0x6aa   : > { %v2340_v57 = vpop.f32.mrf.mxu1 }
 0x6ab   : > { %v2341_v16 = vadd.f32 %v2340_v57, %v2255_v11 }
 0x6ac   : > { %v2342_v0 = vpop.f32.mrf.mxu1 }
 0x6ad   : > { %v2351_v19 = vsub.f32 0.0, %v2341_v16  ;;  %v2343_v7 = vadd.f32 %v2342_v0, %v2255_v11 }
 0x6ae   : > { %v2346_v39 = vpop.f32.mrf.mxu1 }
 0x6af   : > { %v2355_v41 = vmul.f32 1.442695, %v2351_v19  ;;  %v2352_v43 = vsub.f32 0.0, %v2343_v7  ;;  %v2347_v26 = vadd.f32 %v2346_v39, %v2260_v31  ;;  %v2776_v39 = vld [vmem:[%s2867_s29] sm:$0x77] }
 0x6b0   : > { %v2348_v51 = vpop.f32.mrf.mxu1 }
 0x6b1   : > { %v2357_v55 = vmul.f32 1.442695, %v2352_v43  ;;  %v2353_v58 = vsub.f32 0.0, %v2347_v26  ;;  %v2349_v10 = vadd.f32 %v2348_v51, %v2260_v31  ;;  %2746 = vpow2.f32 %v2355_v41 }
 0x6b3   : > { %2748 = vpow2.f32 %v2357_v55  ;;  %v2359_v42 = vmul.f32 1.442695, %v2353_v58  ;;  %v2354_v30 = vsub.f32 0.0, %v2349_v10 }
 0x6b5   : > { %2750 = vpow2.f32 %v2359_v42  ;;  %v2361_v25 = vmul.f32 1.442695, %v2354_v30 }
 0x6b7   : > { %2752 = vpow2.f32 %v2361_v25 }
 0x6b8   : > { %2754 = vrcp.f32 %v738_v2 }
 0x6b9   : > { %2756 = vrcp.f32 %v737_v3 }
 0x6be   : > { %v2747_v15 = vpop.eup %2746 }
 0x6bf   : > { %v2363_v33 = vadd.f32 1.0, %v2747_v15 }
 0x6c0   : > { %v2749_v4 = vpop.eup %2748 }
 0x6c1   : > { %v2364_v8 = vadd.f32 1.0, %v2749_v4 }
 0x6c2   : > { %v2751_v37 = vpop.eup %2750 }
 0x6c3   : > { %v2365_v17 = vadd.f32 1.0, %v2751_v37  ;;  %2758 = vrcp.f32 %v2364_v8 }
 0x6c4   : > { %v2753_v61 = vpop.eup %2752 }
 0x6c5   : > { %2760 = vrcp.f32 %v2365_v17  ;;  %v2366_v53 = vadd.f32 1.0, %v2753_v61  ;;  %v2755_v32 = vpop.eup %2754 }
 0x6c6   : > { %2762 = vrcp.f32 %v2363_v33  ;;  %v2757_v34 = vpop.eup %2756  ;;  %v750_v47 = vmul.f32 %v2755_v32, %v714_v21 }
 0x6c7   : > { %2764 = vrcp.f32 %v2366_v53  ;;  %v749_v50 = vmul.f32 %v2757_v34, %v713_v56 }
 0x6c8   : > { %v2384_v54 = vrot.slane %v750_v47, 4 }
 0x6c9   : > { %v2381_v14 = vrot.slane %v749_v50, 4 }
 0x6ca   : > { %v2385_v49 = vsel %vm817_vm5, %v2383_v52, %v2384_v54 }
 0x6cb   : > { %v2382_v20 = vsel %vm817_vm5, %v2380_v60, %v2381_v14 }
 0x6d0   : > { %v2759_v5 = vpop.eup %2758 }
 0x6d1   : > { %v2372_v62 = vmul.f32 %v2759_v5, %v2343_v7 }
 0x6d2   : > { %v2761_v40 = vpop.eup %2760 }
 0x6d3   : > { %v2763_v44 = vpop.eup %2762  ;;  %v2373_v48 = vmul.f32 %v2761_v40, %v2347_v26  ;;  %v2391_v13 = vadd.f32 %v2385_v49, %v2372_v62 }
 0x6d4   : > { %v2765_v12 = vpop.eup %2764  ;;  %v2371_v22 = vmul.f32 %v2763_v44, %v2341_v16 }
 0x6d5   : > { %v2374_v35 = vmul.f32 %v2765_v12, %v2349_v10  ;;  %v2392_v24 = vadd.f32 %v2381_v14, %v2373_v48 }
 0x6d6   : > { %v2390_v9 = vadd.f32 %v2382_v20, %v2371_v22 }
 0x6d7   : > { %v2393_v59 = vadd.f32 %v2384_v54, %v2374_v35 }
 0x6d9   : > { %2594 = vmatprep.subr.msk.mxu0 %vm817_vm5, %v2393_v59 }
 0x6da   : > { %2595 = vmatpush1.msk.msra.mxu0 %vm817_vm5, %v2392_v24 }
 0x6db   : > { %2440 = vmatprep.subr.mxu0 %v2391_v13 }
 0x6dc   : > { %2441 = vmatpush1.msra.mxu0 %v2390_v9 }
 0x6dd   : > { %2596 = vmatmul.mubr.msk.f32.vlgmr.msra.gmra.mxu0 %vm2400_vm6, %v2375_v63 }
 0x79d   : > { %v2476_v38 = vpop.f32.mrf.mxu0 }
 0x79e   : > { %v2477_v18 = vadd.f32 %v2476_v38, %v2398_v36 }
 0x79f   : > { %v2478_v1 = vpop.f32.mrf.mxu0 }
 0x7a0   : > { %v2481_v21 = vsub.f32 0.0, %v2477_v18  ;;  %v2479_v56 = vadd.f32 %v2478_v1, %v2398_v36 }
 0x7a2   : > { %v2483_v31 = vmul.f32 1.442695, %v2481_v21  ;;  %v2482_v27 = vsub.f32 0.0, %v2479_v56 }
 0x7a4   : > { %2766 = vpow2.f32 %v2483_v31  ;;  %v2485_v6 = vmul.f32 1.442695, %v2482_v27 }
 0x7a6   : > { %2768 = vpow2.f32 %v2485_v6 }
 0x7b1   : > { %v2767_v29 = vpop.eup %2766 }
 0x7b2   : > { %v2487_v11 = vadd.f32 1.0, %v2767_v29 }
 0x7b3   : > { %v2769_v46 = vpop.eup %2768 }
 0x7b4   : > { %2770 = vrcp.f32 %v2487_v11  ;;  %v2488_v57 = vadd.f32 1.0, %v2769_v46 }
 0x7b6   : > { %2772 = vrcp.f32 %v2488_v57 }
 0x7c1   : > { %v2771_v16 = vpop.eup %2770 }
 0x7c2   : > { %v2491_v0 = vmul.f32 %v2771_v16, %v2477_v18 }
 0x7c3   : > { %v2773_v19 = vpop.eup %2772 }
 0x7c4   : > { %v2492_v7 = vmul.f32 %v2773_v19, %v2479_v56  ;;  %v2494_v41 = vadd.f32 %v2776_v39, %v2491_v0 }
 0x7c6   : > { %v2495_v43 = vadd.f32 %v2492_v7, %v2897_v28 }
 0x7c8   : > { %v2498_v26 = vcombine.low %v2494_v41, %v2495_v43 }
 0x7ca   : > { %2500 = vst [vmem:[%s278_s19] sm:$0x77] %v2498_v26 }
 0x7cb PF: > { %s17_s24 = sadd.s32 1, %s2783_s24  }
 0x7cc   : > { %p14_p4 = scmp.ge.s32.totalorder %s17_s24, 4  }
 0x7ce   :  { %16 = sbr.rel (!%p14_p4) target bundleno = 1 (0x1), region = 83 }

</bundles_post_ra>
